<compile_context>
chip_gen: v5e
topology: v5e:2x2
jax: 0.10.0
libtpu: 0.0.40
codegen_flags: <defaults>
</compile_context>

<pallas_src>
import functools

import jax
import jax.numpy as jnp
from jax.experimental import pallas as pl
from jax.experimental.pallas import tpu as pltpu


def mbconv_kernel(
    x_ref,                       # (Cin, HW)    f32 input tile (one batch elem)
    wmask_ref,                   # (K, HW)      0/1 f32 row-boundary masks per kw
    w_exp_ref, b_exp_ref,        # (Cexp, Cin)  BN0-folded, (Cexp, 1)
    w_dw_ref, b_dw_ref,          # (Cexp, K*K)  BN1-folded, (Cexp, 1)
    w_ser_ref, b_ser_ref,        # (Cexp, Cse), (1, Cse)
    w_seet_ref, b_see_ref,       # (Cexp, Cse)  [se_expand transposed], (Cexp, 1)
    w_sa1_ref, w_sa2t_ref,       # (Cexp, Cr),  (Cexp, Cr)  [sa fc2 transposed]
    w_ca1_ref, w_ca2t_ref,       # (Cexp, Cr),  (Cexp, Cr)  [ca fc2 transposed]
    w_pr_ref, b_pr_ref,          # (Cout, Cexp) BN2-folded, (Cout, 1)
    out_ref,                     # (Cout, HW)
    *, W, K, pad, id_skip):
    Cexp = w_exp_ref.shape[0]
    Cr = w_ca1_ref.shape[1]

    x_in = x_ref[...]                                       # (Cin, HW) f32

    # ---- expand 1x1 conv (+ folded BN0) + ReLU — MXU with lane-dense N=HW --
    x = jnp.dot(w_exp_ref[...], x_in, preferred_element_type=jnp.float32)
    x = jnp.maximum(x + b_exp_ref[...], 0.0)                # (Cexp, HW)

    # ---- depthwise KxK conv, stride 1, zero padding ----
    def shift_lanes(t, d):
        # out[:, p] = t[:, p + d]; zero-filled where p + d falls off the array.
        if d == 0:
            return t
        z = jnp.zeros((t.shape[0], abs(d)), t.dtype)
        if d > 0:
            return jnp.concatenate([t[:, d:], z], axis=1)
        return jnp.concatenate([z, t[:, :d]], axis=1)

    w_dw = w_dw_ref[...]                                    # (Cexp, K*K)

    # W-shifted, boundary-masked taps (one per kernel column), reused for all kh.
    taps = []
    for kw in range(K):
        dw = kw - pad
        t = shift_lanes(x, dw)
        if dw != 0:
            t = t * wmask_ref[kw:kw + 1, :]                 # zero row-crossing cols
        taps.append(t)

    acc = None
    for kh in range(K):
        dh = kh - pad
        part = None
        for kw in range(K):
            idx = kh * K + kw
            term = taps[kw] * w_dw[:, idx:idx + 1]          # per-channel weight
            part = term if part is None else part + term
        part = shift_lanes(part, dh * W)                    # one H shift per row
        acc = part if acc is None else acc + part

    # folded (dw-conv bias + BN1) bias + ReLU
    x = jnp.maximum(acc + b_dw_ref[...], 0.0)               # (Cexp, HW)

    # ---- SqueezeExcitation: x *= sigmoid(expand(relu(reduce(pool(x))))) ----
    # Tiny matvecs on VPU/XLU (no M=1 MXU round-trips); orientations alternate
    # column -> row -> column so no transposes are needed.
    pooled = jnp.mean(x, axis=1, keepdims=True)                            # (Cexp,1)
    h = jnp.sum(pooled * w_ser_ref[...], axis=0, keepdims=True) + b_ser_ref[...]
    h = jnp.maximum(h, 0.0)                                                # (1,Cse)
    g = jnp.sum(w_seet_ref[...] * h, axis=1, keepdims=True) + b_see_ref[...]
    x = x * jax.nn.sigmoid(g)                                              # (Cexp,HW)

    # ---- "SpatialAttention" (pooled channel gate, no bias): x = x*(g*x) ----
    pooled = jnp.mean(x, axis=1, keepdims=True)
    h = jnp.maximum(jnp.sum(pooled * w_sa1_ref[...], axis=0, keepdims=True), 0.0)
    g = jax.nn.sigmoid(jnp.sum(w_sa2t_ref[...] * h, axis=1, keepdims=True))
    x = x * (g * x)

    # ---- ChannelAttention (per-pixel 1x1 MLP, Cr tiny) on the VPU/XLU ----
    w_ca1 = w_ca1_ref[...]                                  # (Cexp, Cr)
    w_ca2t = w_ca2t_ref[...]                                # (Cexp, Cr)
    gate = None
    for r in range(Cr):
        h_r = jnp.sum(x * w_ca1[:, r:r + 1], axis=0, keepdims=True)   # (1, HW)
        h_r = jnp.maximum(h_r, 0.0)
        term = w_ca2t[:, r:r + 1] * h_r                                # (Cexp, HW)
        gate = term if gate is None else gate + term
    x = x * (jax.nn.sigmoid(gate) * x)

    # ---- project 1x1 conv (+ folded BN2) + identity skip ----
    y = jnp.dot(w_pr_ref[...], x, preferred_element_type=jnp.float32)
    y = y + b_pr_ref[...]
    if id_skip:
        y = y + x_in                                        # Cin == Cout here
    out_ref[...] = y


def mbconv_pallas(x_nchw, params, *, K, pad, id_skip):
    # NCHW -> (N, C, H*W): pure reshape, no transpose.
    N, Cin, H, W = x_nchw.shape
    HW = H * W
    x = x_nchw.reshape(N, Cin, HW).astype(jnp.float32)

    p = params
    Cexp = p['w_exp'].shape[1]
    Cout = p['w_pr'].shape[1]

    # ---- fold BatchNorms (eval-mode affine) + conv biases; channels-major ----
    w_exp = (p['w_exp'] * p['bn0_s']).T                                   # (Cexp, Cin)
    b_exp = (p['b_exp'] * p['bn0_s'] + p['bn0_b']).reshape(Cexp, 1)
    w_dw = jnp.transpose((p['w_dw'] * p['bn1_s']).reshape(K * K, Cexp))   # (Cexp, K*K)
    b_dw = (p['b_dwc'] * p['bn1_s'] + p['bn1_b']).reshape(Cexp, 1)
    w_seet = p['w_see'].T                                                 # (Cexp, Cse)
    b_see = p['b_see'].reshape(Cexp, 1)
    w_sa2t = p['w_sa2'].T                                                 # (Cexp, Cr)
    w_ca2t = p['w_ca2'].T                                                 # (Cexp, Cr)
    w_pr = (p['w_pr'] * p['bn2_s']).T                                     # (Cout, Cexp)
    b_pr = (p['b_pr'] * p['bn2_s'] + p['bn2_b']).reshape(Cout, 1)

    # 0/1 masks that zero columns whose W-shifted source crossed a row boundary.
    w_coord = jnp.arange(HW, dtype=jnp.int32) % W
    wmask = jnp.stack(
        [((w_coord + (kw - pad) >= 0) & (w_coord + (kw - pad) < W))
         .astype(jnp.float32) for kw in range(K)], axis=0)                # (K, HW)

    consts = [wmask, w_exp, b_exp, w_dw, b_dw,
              p['w_ser'], p['b_ser'], w_seet, b_see,
              p['w_sa1'], w_sa2t, p['w_ca1'], w_ca2t,
              w_pr, b_pr]

    def full_spec(a):
        nd = a.ndim
        return pl.BlockSpec(a.shape, lambda n, _nd=nd: (0,) * _nd)

    in_specs = ([pl.BlockSpec((None, Cin, HW), lambda n: (n, 0, 0))]
                + [full_spec(a) for a in consts])
    out_spec = pl.BlockSpec((None, Cout, HW), lambda n: (n, 0, 0))

    kern = functools.partial(mbconv_kernel, W=W, K=K, pad=pad, id_skip=id_skip)
    out = pl.pallas_call(
        kern,
        grid=(N,),
        in_specs=in_specs,
        out_specs=out_spec,
        out_shape=jax.ShapeDtypeStruct((N, Cout, HW), jnp.float32),
        compiler_params=pltpu.CompilerParams(
            # batch elements are independent -> 2-way split feeds both v7x TCs;
            # costs one extra ~0.35us grid step on single-TC v5e/v6e.
            dimension_semantics=("parallel",)),
    )(x, *consts)
    return out.reshape(N, Cout, H, W)                       # reshape only, no transpose


def make_params(key, Cin, Cexp, Cse, Cr, Cout, K):
    ks = iter(jax.random.split(key, 40))

    def rnd(shape, s=0.2):
        return jax.random.normal(next(ks), shape, jnp.float32) * s

    def bn(C):
        eps = 1e-5
        gamma = 1.0 + 0.1 * jax.random.normal(next(ks), (1, C), jnp.float32)
        beta = 0.1 * jax.random.normal(next(ks), (1, C), jnp.float32)
        mean = 0.1 * jax.random.normal(next(ks), (1, C), jnp.float32)
        var = jax.random.uniform(next(ks), (1, C), jnp.float32, minval=0.5, maxval=1.5)
        scale = gamma / jnp.sqrt(var + eps)
        shift = beta - mean * scale
        return scale, shift

    p = {}
    p['w_exp'] = rnd((Cin, Cexp)); p['b_exp'] = rnd((1, Cexp), 0.1)
    p['bn0_s'], p['bn0_b'] = bn(Cexp)
    p['w_dw'] = rnd((K, K, Cexp)); p['b_dwc'] = rnd((1, Cexp), 0.1)
    p['bn1_s'], p['bn1_b'] = bn(Cexp)
    p['w_ser'] = rnd((Cexp, Cse)); p['b_ser'] = rnd((1, Cse), 0.1)
    p['w_see'] = rnd((Cse, Cexp)); p['b_see'] = rnd((1, Cexp), 0.1)
    p['w_sa1'] = rnd((Cexp, Cr)); p['w_sa2'] = rnd((Cr, Cexp))
    p['w_ca1'] = rnd((Cexp, Cr)); p['w_ca2'] = rnd((Cr, Cexp))
    p['w_pr'] = rnd((Cexp, Cout)); p['b_pr'] = rnd((1, Cout), 0.1)
    p['bn2_s'], p['bn2_b'] = bn(Cout)
    return p


def ref_forward(x_nhwc, p, *, K, pad, id_skip):
    """Pure-JAX f32 NHWC reference of the same eval-mode forward pass."""
    hi = jax.lax.Precision.HIGHEST
    x0 = x_nhwc.astype(jnp.float32)
    H, W = x0.shape[1], x0.shape[2]

    x = jnp.einsum('nhwc,cd->nhwd', x0, p['w_exp'], precision=hi) + p['b_exp']
    x = jax.nn.relu(x * p['bn0_s'] + p['bn0_b'])

    xp = jnp.pad(x, ((0, 0), (pad, pad), (pad, pad), (0, 0)))
    acc = jnp.zeros_like(x)
    for kh in range(K):
        for kw in range(K):
            acc = acc + xp[:, kh:kh + H, kw:kw + W, :] * p['w_dw'][kh, kw]
    x = jax.nn.relu((acc + p['b_dwc']) * p['bn1_s'] + p['bn1_b'])

    pooled = jnp.mean(x, axis=(1, 2), keepdims=True)
    se = jax.nn.relu(jnp.einsum('nhwc,cd->nhwd', pooled, p['w_ser'], precision=hi) + p['b_ser'])
    se = jax.nn.sigmoid(jnp.einsum('nhwc,cd->nhwd', se, p['w_see'], precision=hi) + p['b_see'])
    x = x * se

    pooled = jnp.mean(x, axis=(1, 2), keepdims=True)
    sa = jax.nn.relu(jnp.einsum('nhwc,cd->nhwd', pooled, p['w_sa1'], precision=hi))
    sa = jax.nn.sigmoid(jnp.einsum('nhwc,cd->nhwd', sa, p['w_sa2'], precision=hi))
    x = x * (sa * x)

    ca = jax.nn.relu(jnp.einsum('nhwc,cd->nhwd', x, p['w_ca1'], precision=hi))
    ca = jax.nn.sigmoid(jnp.einsum('nhwc,cd->nhwd', ca, p['w_ca2'], precision=hi))
    x = x * (ca * x)

    y = jnp.einsum('nhwc,cd->nhwd', x, p['w_pr'], precision=hi) + p['b_pr']
    y = y * p['bn2_s'] + p['bn2_b']
    if id_skip:
        y = y + x0
    return y


if __name__ == "__main__":
    # Module config: MBConvBlock(in=16, out=16, kernel_size=3, stride=1,
    #                            expand_ratio=2, se_ratio=0.25, reduction_ratio=16)
    N, Cin, H, W = 2, 16, 16, 16
    K, stride, expand_ratio, se_ratio, rr = 3, 1, 2, 0.25, 16
    Cout = 16
    Cexp = int(Cin * expand_ratio)          # 32
    Cse = int(Cexp * se_ratio)              # 8
    Cr = Cexp // rr                         # 2
    pad = (K - 1) // 2
    id_skip = (stride == 1 and Cin == Cout)

    key = jax.random.PRNGKey(0)
    kx, kp = jax.random.split(key)
    x_nchw = jax.random.normal(kx, (N, Cin, H, W), jnp.float32)
    params = make_params(kp, Cin, Cexp, Cse, Cr, Cout, K)

    out = mbconv_pallas(x_nchw, params, K=K, pad=pad, id_skip=id_skip)
    out = jax.block_until_ready(out)
    assert out.shape == (N, Cout, H, W)

    ref = ref_forward(jnp.transpose(x_nchw, (0, 2, 3, 1)), params,
                      K=K, pad=pad, id_skip=id_skip)
    ref = jnp.transpose(ref, (0, 3, 1, 2))
    max_err = float(jnp.max(jnp.abs(out - ref)))
    # All-f32 kernel; loose tolerance only to cover default-precision MXU
    # passes and reduction-order differences vs the HIGHEST-precision reference.
    if not bool(jnp.allclose(out, ref, atol=2e-2, rtol=2e-2)):
        raise AssertionError(f"Pallas output mismatch vs reference, max abs err = {max_err}")

    print("KERNEL_OK")
</pallas_src>

<mosaic_0001>
module attributes {stable_mosaic.version = 11 : i64} {
  func.func @mbconv_kernel(%arg0: i32, %arg1: memref<1x16x256xf32, #tpu.memory_space<vmem>>, %arg2: memref<3x256xf32, #tpu.memory_space<vmem>>, %arg3: memref<32x16xf32, #tpu.memory_space<vmem>>, %arg4: memref<32x1xf32, #tpu.memory_space<vmem>>, %arg5: memref<32x9xf32, #tpu.memory_space<vmem>>, %arg6: memref<32x1xf32, #tpu.memory_space<vmem>>, %arg7: memref<32x8xf32, #tpu.memory_space<vmem>>, %arg8: memref<1x8xf32, #tpu.memory_space<vmem>>, %arg9: memref<32x8xf32, #tpu.memory_space<vmem>>, %arg10: memref<32x1xf32, #tpu.memory_space<vmem>>, %arg11: memref<32x2xf32, #tpu.memory_space<vmem>>, %arg12: memref<32x2xf32, #tpu.memory_space<vmem>>, %arg13: memref<32x2xf32, #tpu.memory_space<vmem>>, %arg14: memref<32x2xf32, #tpu.memory_space<vmem>>, %arg15: memref<16x32xf32, #tpu.memory_space<vmem>>, %arg16: memref<16x1xf32, #tpu.memory_space<vmem>>, %arg17: memref<1x16x256xf32, #tpu.memory_space<vmem>>) attributes {dimension_semantics = [#tpu.dimension_semantics<parallel>], iteration_bounds = array<i64: 2>, scalar_prefetch = 0 : i64, scratch_operands = 0 : i64, tpu.core_type = #tpu.core_type<tc>, window_params = [{transform_indices = @transform_0, window_bounds = array<i64: 1, 16, 256>}, {pipeline_mode = #tpu.pipeline_mode<synchronous>, transform_indices = @transform_1, window_bounds = array<i64: 3, 256>}, {pipeline_mode = #tpu.pipeline_mode<synchronous>, transform_indices = @transform_2, window_bounds = array<i64: 32, 16>}, {pipeline_mode = #tpu.pipeline_mode<synchronous>, transform_indices = @transform_3, window_bounds = array<i64: 32, 1>}, {pipeline_mode = #tpu.pipeline_mode<synchronous>, transform_indices = @transform_4, window_bounds = array<i64: 32, 9>}, {pipeline_mode = #tpu.pipeline_mode<synchronous>, transform_indices = @transform_5, window_bounds = array<i64: 32, 1>}, {pipeline_mode = #tpu.pipeline_mode<synchronous>, transform_indices = @transform_6, window_bounds = array<i64: 32, 8>}, {pipeline_mode = #tpu.pipeline_mode<synchronous>, transform_indices = @transform_7, window_bounds = array<i64: 1, 8>}, {pipeline_mode = #tpu.pipeline_mode<synchronous>, transform_indices = @transform_8, window_bounds = array<i64: 32, 8>}, {pipeline_mode = #tpu.pipeline_mode<synchronous>, transform_indices = @transform_9, window_bounds = array<i64: 32, 1>}, {pipeline_mode = #tpu.pipeline_mode<synchronous>, transform_indices = @transform_10, window_bounds = array<i64: 32, 2>}, {pipeline_mode = #tpu.pipeline_mode<synchronous>, transform_indices = @transform_11, window_bounds = array<i64: 32, 2>}, {pipeline_mode = #tpu.pipeline_mode<synchronous>, transform_indices = @transform_12, window_bounds = array<i64: 32, 2>}, {pipeline_mode = #tpu.pipeline_mode<synchronous>, transform_indices = @transform_13, window_bounds = array<i64: 32, 2>}, {pipeline_mode = #tpu.pipeline_mode<synchronous>, transform_indices = @transform_14, window_bounds = array<i64: 16, 32>}, {pipeline_mode = #tpu.pipeline_mode<synchronous>, transform_indices = @transform_15, window_bounds = array<i64: 16, 1>}, {transform_indices = @transform_16, window_bounds = array<i64: 1, 16, 256>}]} {
    %c0 = arith.constant 0 : index
    %c0_0 = arith.constant 0 : index
    %c0_1 = arith.constant 0 : index
    %0 = vector.load %arg1[%c0, %c0_0, %c0_1] : memref<1x16x256xf32, #tpu.memory_space<vmem>>, vector<1x16x256xf32>
    %1 = vector.shape_cast %0 : vector<1x16x256xf32> to vector<16x256xf32>
    %c0_2 = arith.constant 0 : index
    %c0_3 = arith.constant 0 : index
    %2 = vector.load %arg3[%c0_2, %c0_3] : memref<32x16xf32, #tpu.memory_space<vmem>>, vector<32x16xf32>
    %cst = arith.constant dense<0.000000e+00> : vector<32x256xf32>
    %3 = tpu.matmul %2, %1, %cst {dimension_numbers = #tpu.dot_dimension_numbers<[1], [0], [0], [1], [0, 0, 1, 1], [], []>} : vector<32x16xf32>, vector<16x256xf32>, vector<32x256xf32> -> vector<32x256xf32>
    %c0_4 = arith.constant 0 : index
    %c0_5 = arith.constant 0 : index
    %4 = vector.load %arg4[%c0_4, %c0_5] : memref<32x1xf32, #tpu.memory_space<vmem>>, vector<32x1xf32>
    %5 = vector.broadcast %4 : vector<32x1xf32> to vector<32x256xf32>
    %6 = arith.addf %3, %5 : vector<32x256xf32>
    %cst_6 = arith.constant 0.000000e+00 : f32
    %7 = vector.broadcast %cst_6 : f32 to vector<32x256xf32>
    %8 = arith.maximumf %6, %7 : vector<32x256xf32>
    %c0_7 = arith.constant 0 : index
    %c0_8 = arith.constant 0 : index
    %9 = vector.load %arg5[%c0_7, %c0_8] : memref<32x9xf32, #tpu.memory_space<vmem>>, vector<32x9xf32>
    %cst_9 = arith.constant 0.000000e+00 : f32
    %10 = vector.broadcast %cst_9 : f32 to vector<32x1xf32>
    %11 = vector.extract_strided_slice %8 {offsets = [0, 0], sizes = [32, 255], strides = [1, 1]} : vector<32x256xf32> to vector<32x255xf32>
    %12 = tpu.concatenate %10, %11 in 1 : vector<32x1xf32>, vector<32x255xf32> -> vector<32x256xf32>
    %c0_10 = arith.constant 0 : index
    %c0_11 = arith.constant 0 : index
    %13 = vector.load %arg2[%c0_10, %c0_11] : memref<3x256xf32, #tpu.memory_space<vmem>>, vector<1x256xf32>
    %14 = vector.broadcast %13 : vector<1x256xf32> to vector<32x256xf32>
    %15 = arith.mulf %12, %14 : vector<32x256xf32>
    %cst_12 = arith.constant 0.000000e+00 : f32
    %16 = vector.broadcast %cst_12 : f32 to vector<32x1xf32>
    %17 = vector.extract_strided_slice %8 {offsets = [0, 1], sizes = [32, 255], strides = [1, 1]} : vector<32x256xf32> to vector<32x255xf32>
    %18 = tpu.concatenate %17, %16 in 1 : vector<32x255xf32>, vector<32x1xf32> -> vector<32x256xf32>
    %c2 = arith.constant 2 : index
    %c0_13 = arith.constant 0 : index
    %19 = vector.load %arg2[%c2, %c0_13] : memref<3x256xf32, #tpu.memory_space<vmem>>, vector<1x256xf32>
    %20 = vector.broadcast %19 : vector<1x256xf32> to vector<32x256xf32>
    %21 = arith.mulf %18, %20 : vector<32x256xf32>
    %22 = vector.extract_strided_slice %9 {offsets = [0, 0], sizes = [32, 1], strides = [1, 1]} : vector<32x9xf32> to vector<32x1xf32>
    %23 = vector.broadcast %22 : vector<32x1xf32> to vector<32x256xf32>
    %24 = arith.mulf %15, %23 : vector<32x256xf32>
    %25 = vector.extract_strided_slice %9 {offsets = [0, 1], sizes = [32, 1], strides = [1, 1]} : vector<32x9xf32> to vector<32x1xf32>
    %26 = vector.broadcast %25 : vector<32x1xf32> to vector<32x256xf32>
    %27 = arith.mulf %8, %26 : vector<32x256xf32>
    %28 = arith.addf %24, %27 : vector<32x256xf32>
    %29 = vector.extract_strided_slice %9 {offsets = [0, 2], sizes = [32, 1], strides = [1, 1]} : vector<32x9xf32> to vector<32x1xf32>
    %30 = vector.broadcast %29 : vector<32x1xf32> to vector<32x256xf32>
    %31 = arith.mulf %21, %30 : vector<32x256xf32>
    %32 = arith.addf %28, %31 : vector<32x256xf32>
    %cst_14 = arith.constant 0.000000e+00 : f32
    %33 = vector.broadcast %cst_14 : f32 to vector<32x16xf32>
    %34 = vector.extract_strided_slice %32 {offsets = [0, 0], sizes = [32, 240], strides = [1, 1]} : vector<32x256xf32> to vector<32x240xf32>
    %35 = tpu.concatenate %33, %34 in 1 : vector<32x16xf32>, vector<32x240xf32> -> vector<32x256xf32>
    %36 = vector.extract_strided_slice %9 {offsets = [0, 3], sizes = [32, 1], strides = [1, 1]} : vector<32x9xf32> to vector<32x1xf32>
    %37 = vector.broadcast %36 : vector<32x1xf32> to vector<32x256xf32>
    %38 = arith.mulf %15, %37 : vector<32x256xf32>
    %39 = vector.extract_strided_slice %9 {offsets = [0, 4], sizes = [32, 1], strides = [1, 1]} : vector<32x9xf32> to vector<32x1xf32>
    %40 = vector.broadcast %39 : vector<32x1xf32> to vector<32x256xf32>
    %41 = arith.mulf %8, %40 : vector<32x256xf32>
    %42 = arith.addf %38, %41 : vector<32x256xf32>
    %43 = vector.extract_strided_slice %9 {offsets = [0, 5], sizes = [32, 1], strides = [1, 1]} : vector<32x9xf32> to vector<32x1xf32>
    %44 = vector.broadcast %43 : vector<32x1xf32> to vector<32x256xf32>
    %45 = arith.mulf %21, %44 : vector<32x256xf32>
    %46 = arith.addf %42, %45 : vector<32x256xf32>
    %47 = arith.addf %35, %46 : vector<32x256xf32>
    %48 = vector.extract_strided_slice %9 {offsets = [0, 6], sizes = [32, 1], strides = [1, 1]} : vector<32x9xf32> to vector<32x1xf32>
    %49 = vector.broadcast %48 : vector<32x1xf32> to vector<32x256xf32>
    %50 = arith.mulf %15, %49 : vector<32x256xf32>
    %51 = vector.extract_strided_slice %9 {offsets = [0, 7], sizes = [32, 1], strides = [1, 1]} : vector<32x9xf32> to vector<32x1xf32>
    %52 = vector.broadcast %51 : vector<32x1xf32> to vector<32x256xf32>
    %53 = arith.mulf %8, %52 : vector<32x256xf32>
    %54 = arith.addf %50, %53 : vector<32x256xf32>
    %55 = vector.extract_strided_slice %9 {offsets = [0, 8], sizes = [32, 1], strides = [1, 1]} : vector<32x9xf32> to vector<32x1xf32>
    %56 = vector.broadcast %55 : vector<32x1xf32> to vector<32x256xf32>
    %57 = arith.mulf %21, %56 : vector<32x256xf32>
    %58 = arith.addf %54, %57 : vector<32x256xf32>
    %cst_15 = arith.constant 0.000000e+00 : f32
    %59 = vector.broadcast %cst_15 : f32 to vector<32x16xf32>
    %60 = vector.extract_strided_slice %58 {offsets = [0, 16], sizes = [32, 240], strides = [1, 1]} : vector<32x256xf32> to vector<32x240xf32>
    %61 = tpu.concatenate %60, %59 in 1 : vector<32x240xf32>, vector<32x16xf32> -> vector<32x256xf32>
    %62 = arith.addf %47, %61 : vector<32x256xf32>
    %c0_16 = arith.constant 0 : index
    %c0_17 = arith.constant 0 : index
    %63 = vector.load %arg6[%c0_16, %c0_17] : memref<32x1xf32, #tpu.memory_space<vmem>>, vector<32x1xf32>
    %64 = vector.broadcast %63 : vector<32x1xf32> to vector<32x256xf32>
    %65 = arith.addf %62, %64 : vector<32x256xf32>
    %cst_18 = arith.constant 0.000000e+00 : f32
    %66 = vector.broadcast %cst_18 : f32 to vector<32x256xf32>
    %67 = arith.maximumf %65, %66 : vector<32x256xf32>
    %cst_19 = arith.constant dense<0.000000e+00> : vector<32xf32>
    %68 = vector.multi_reduction <add>, %67, %cst_19 [1] : vector<32x256xf32> to vector<32xf32>
    %69 = vector.shape_cast %68 : vector<32xf32> to vector<32x1xf32>
    %cst_20 = arith.constant 2.560000e+02 : f32
    %70 = vector.broadcast %cst_20 : f32 to vector<32x1xf32>
    %71 = arith.divf %69, %70 : vector<32x1xf32>
    %c0_21 = arith.constant 0 : index
    %c0_22 = arith.constant 0 : index
    %72 = vector.load %arg7[%c0_21, %c0_22] : memref<32x8xf32, #tpu.memory_space<vmem>>, vector<32x8xf32>
    %73 = vector.broadcast %71 : vector<32x1xf32> to vector<32x8xf32>
    %74 = arith.mulf %73, %72 : vector<32x8xf32>
    %cst_23 = arith.constant dense<0.000000e+00> : vector<8xf32>
    %75 = vector.multi_reduction <add>, %74, %cst_23 [0] : vector<32x8xf32> to vector<8xf32>
    %76 = vector.shape_cast %75 : vector<8xf32> to vector<1x8xf32>
    %c0_24 = arith.constant 0 : index
    %c0_25 = arith.constant 0 : index
    %77 = vector.load %arg8[%c0_24, %c0_25] : memref<1x8xf32, #tpu.memory_space<vmem>>, vector<1x8xf32>
    %78 = arith.addf %76, %77 : vector<1x8xf32>
    %cst_26 = arith.constant 0.000000e+00 : f32
    %79 = vector.broadcast %cst_26 : f32 to vector<1x8xf32>
    %80 = arith.maximumf %78, %79 : vector<1x8xf32>
    %c0_27 = arith.constant 0 : index
    %c0_28 = arith.constant 0 : index
    %81 = vector.load %arg9[%c0_27, %c0_28] : memref<32x8xf32, #tpu.memory_space<vmem>>, vector<32x8xf32>
    %82 = vector.broadcast %80 : vector<1x8xf32> to vector<32x8xf32>
    %83 = arith.mulf %81, %82 : vector<32x8xf32>
    %cst_29 = arith.constant dense<0.000000e+00> : vector<32xf32>
    %84 = vector.multi_reduction <add>, %83, %cst_29 [1] : vector<32x8xf32> to vector<32xf32>
    %85 = vector.shape_cast %84 : vector<32xf32> to vector<32x1xf32>
    %c0_30 = arith.constant 0 : index
    %c0_31 = arith.constant 0 : index
    %86 = vector.load %arg10[%c0_30, %c0_31] : memref<32x1xf32, #tpu.memory_space<vmem>>, vector<32x1xf32>
    %87 = arith.addf %85, %86 : vector<32x1xf32>
    %88 = arith.negf %87 : vector<32x1xf32>
    %89 = math.exp %88 : vector<32x1xf32>
    %cst_32 = arith.constant 1.000000e+00 : f32
    %90 = vector.broadcast %cst_32 : f32 to vector<32x1xf32>
    %91 = arith.addf %90, %89 : vector<32x1xf32>
    %92 = arith.divf %90, %91 : vector<32x1xf32>
    %93 = vector.broadcast %92 : vector<32x1xf32> to vector<32x256xf32>
    %94 = arith.mulf %67, %93 : vector<32x256xf32>
    %cst_33 = arith.constant dense<0.000000e+00> : vector<32xf32>
    %95 = vector.multi_reduction <add>, %94, %cst_33 [1] : vector<32x256xf32> to vector<32xf32>
    %96 = vector.shape_cast %95 : vector<32xf32> to vector<32x1xf32>
    %cst_34 = arith.constant 2.560000e+02 : f32
    %97 = vector.broadcast %cst_34 : f32 to vector<32x1xf32>
    %98 = arith.divf %96, %97 : vector<32x1xf32>
    %c0_35 = arith.constant 0 : index
    %c0_36 = arith.constant 0 : index
    %99 = vector.load %arg11[%c0_35, %c0_36] : memref<32x2xf32, #tpu.memory_space<vmem>>, vector<32x2xf32>
    %100 = vector.broadcast %98 : vector<32x1xf32> to vector<32x2xf32>
    %101 = arith.mulf %100, %99 : vector<32x2xf32>
    %cst_37 = arith.constant dense<0.000000e+00> : vector<2xf32>
    %102 = vector.multi_reduction <add>, %101, %cst_37 [0] : vector<32x2xf32> to vector<2xf32>
    %103 = vector.shape_cast %102 : vector<2xf32> to vector<1x2xf32>
    %cst_38 = arith.constant 0.000000e+00 : f32
    %104 = vector.broadcast %cst_38 : f32 to vector<1x2xf32>
    %105 = arith.maximumf %103, %104 : vector<1x2xf32>
    %c0_39 = arith.constant 0 : index
    %c0_40 = arith.constant 0 : index
    %106 = vector.load %arg12[%c0_39, %c0_40] : memref<32x2xf32, #tpu.memory_space<vmem>>, vector<32x2xf32>
    %107 = vector.broadcast %105 : vector<1x2xf32> to vector<32x2xf32>
    %108 = arith.mulf %106, %107 : vector<32x2xf32>
    %cst_41 = arith.constant dense<0.000000e+00> : vector<32xf32>
    %109 = vector.multi_reduction <add>, %108, %cst_41 [1] : vector<32x2xf32> to vector<32xf32>
    %110 = vector.shape_cast %109 : vector<32xf32> to vector<32x1xf32>
    %111 = arith.negf %110 : vector<32x1xf32>
    %112 = math.exp %111 : vector<32x1xf32>
    %cst_42 = arith.constant 1.000000e+00 : f32
    %113 = vector.broadcast %cst_42 : f32 to vector<32x1xf32>
    %114 = arith.addf %113, %112 : vector<32x1xf32>
    %115 = arith.divf %113, %114 : vector<32x1xf32>
    %116 = vector.broadcast %115 : vector<32x1xf32> to vector<32x256xf32>
    %117 = arith.mulf %116, %94 : vector<32x256xf32>
    %118 = arith.mulf %94, %117 : vector<32x256xf32>
    %c0_43 = arith.constant 0 : index
    %c0_44 = arith.constant 0 : index
    %119 = vector.load %arg13[%c0_43, %c0_44] : memref<32x2xf32, #tpu.memory_space<vmem>>, vector<32x2xf32>
    %c0_45 = arith.constant 0 : index
    %c0_46 = arith.constant 0 : index
    %120 = vector.load %arg14[%c0_45, %c0_46] : memref<32x2xf32, #tpu.memory_space<vmem>>, vector<32x2xf32>
    %121 = vector.extract_strided_slice %119 {offsets = [0, 0], sizes = [32, 1], strides = [1, 1]} : vector<32x2xf32> to vector<32x1xf32>
    %122 = vector.broadcast %121 : vector<32x1xf32> to vector<32x256xf32>
    %123 = arith.mulf %118, %122 : vector<32x256xf32>
    %cst_47 = arith.constant dense<0.000000e+00> : vector<256xf32>
    %124 = vector.multi_reduction <add>, %123, %cst_47 [0] : vector<32x256xf32> to vector<256xf32>
    %125 = vector.shape_cast %124 : vector<256xf32> to vector<1x256xf32>
    %cst_48 = arith.constant 0.000000e+00 : f32
    %126 = vector.broadcast %cst_48 : f32 to vector<1x256xf32>
    %127 = arith.maximumf %125, %126 : vector<1x256xf32>
    %128 = vector.extract_strided_slice %120 {offsets = [0, 0], sizes = [32, 1], strides = [1, 1]} : vector<32x2xf32> to vector<32x1xf32>
    %129 = vector.broadcast %128 : vector<32x1xf32> to vector<32x256xf32>
    %130 = vector.broadcast %127 : vector<1x256xf32> to vector<32x256xf32>
    %131 = arith.mulf %129, %130 : vector<32x256xf32>
    %132 = vector.extract_strided_slice %119 {offsets = [0, 1], sizes = [32, 1], strides = [1, 1]} : vector<32x2xf32> to vector<32x1xf32>
    %133 = vector.broadcast %132 : vector<32x1xf32> to vector<32x256xf32>
    %134 = arith.mulf %118, %133 : vector<32x256xf32>
    %cst_49 = arith.constant dense<0.000000e+00> : vector<256xf32>
    %135 = vector.multi_reduction <add>, %134, %cst_49 [0] : vector<32x256xf32> to vector<256xf32>
    %136 = vector.shape_cast %135 : vector<256xf32> to vector<1x256xf32>
    %cst_50 = arith.constant 0.000000e+00 : f32
    %137 = vector.broadcast %cst_50 : f32 to vector<1x256xf32>
    %138 = arith.maximumf %136, %137 : vector<1x256xf32>
    %139 = vector.extract_strided_slice %120 {offsets = [0, 1], sizes = [32, 1], strides = [1, 1]} : vector<32x2xf32> to vector<32x1xf32>
    %140 = vector.broadcast %139 : vector<32x1xf32> to vector<32x256xf32>
    %141 = vector.broadcast %138 : vector<1x256xf32> to vector<32x256xf32>
    %142 = arith.mulf %140, %141 : vector<32x256xf32>
    %143 = arith.addf %131, %142 : vector<32x256xf32>
    %144 = arith.negf %143 : vector<32x256xf32>
    %145 = math.exp %144 : vector<32x256xf32>
    %cst_51 = arith.constant 1.000000e+00 : f32
    %146 = vector.broadcast %cst_51 : f32 to vector<32x256xf32>
    %147 = arith.addf %146, %145 : vector<32x256xf32>
    %148 = arith.divf %146, %147 : vector<32x256xf32>
    %149 = arith.mulf %148, %118 : vector<32x256xf32>
    %150 = arith.mulf %118, %149 : vector<32x256xf32>
    %c0_52 = arith.constant 0 : index
    %c0_53 = arith.constant 0 : index
    %151 = vector.load %arg15[%c0_52, %c0_53] : memref<16x32xf32, #tpu.memory_space<vmem>>, vector<16x32xf32>
    %cst_54 = arith.constant dense<0.000000e+00> : vector<16x256xf32>
    %152 = tpu.matmul %151, %150, %cst_54 {dimension_numbers = #tpu.dot_dimension_numbers<[1], [0], [0], [1], [0, 0, 1, 1], [], []>} : vector<16x32xf32>, vector<32x256xf32>, vector<16x256xf32> -> vector<16x256xf32>
    %c0_55 = arith.constant 0 : index
    %c0_56 = arith.constant 0 : index
    %153 = vector.load %arg16[%c0_55, %c0_56] : memref<16x1xf32, #tpu.memory_space<vmem>>, vector<16x1xf32>
    %154 = vector.broadcast %153 : vector<16x1xf32> to vector<16x256xf32>
    %155 = arith.addf %152, %154 : vector<16x256xf32>
    %156 = arith.addf %155, %1 : vector<16x256xf32>
    %c0_57 = arith.constant 0 : index
    %c0_58 = arith.constant 0 : index
    %c0_59 = arith.constant 0 : index
    %157 = vector.load %arg17[%c0_57, %c0_58, %c0_59] : memref<1x16x256xf32, #tpu.memory_space<vmem>>, vector<1x16x256xf32>
    %158 = vector.shape_cast %157 : vector<1x16x256xf32> to vector<16x256xf32>
    %159 = vector.shape_cast %156 : vector<16x256xf32> to vector<1x16x256xf32>
    tpu.vector_store %arg17[%c0_57, %c0_58, %c0_59], %159 {strides = array<i32>} : memref<1x16x256xf32, #tpu.memory_space<vmem>>, vector<1x16x256xf32>,
    return
  }
  func.func @transform_0(%arg0: i32) -> (i32, i32, i32) {
    %c0_i32 = arith.constant 0 : i32
    %c0_i32_0 = arith.constant 0 : i32
    %c0_i32_1 = arith.constant 0 : i32
    return %arg0, %c0_i32, %c0_i32_0 : i32, i32, i32
  }
  func.func @transform_1(%arg0: i32) -> (i32, i32) {
    %c0_i32 = arith.constant 0 : i32
    %c0_i32_0 = arith.constant 0 : i32
    %c0_i32_1 = arith.constant 0 : i32
    return %c0_i32, %c0_i32_0 : i32, i32
  }
  func.func @transform_2(%arg0: i32) -> (i32, i32) {
    %c0_i32 = arith.constant 0 : i32
    %c0_i32_0 = arith.constant 0 : i32
    %c0_i32_1 = arith.constant 0 : i32
    return %c0_i32, %c0_i32_0 : i32, i32
  }
  func.func @transform_3(%arg0: i32) -> (i32, i32) {
    %c0_i32 = arith.constant 0 : i32
    %c0_i32_0 = arith.constant 0 : i32
    %c0_i32_1 = arith.constant 0 : i32
    return %c0_i32, %c0_i32_0 : i32, i32
  }
  func.func @transform_4(%arg0: i32) -> (i32, i32) {
    %c0_i32 = arith.constant 0 : i32
    %c0_i32_0 = arith.constant 0 : i32
    %c0_i32_1 = arith.constant 0 : i32
    return %c0_i32, %c0_i32_0 : i32, i32
  }
  func.func @transform_5(%arg0: i32) -> (i32, i32) {
    %c0_i32 = arith.constant 0 : i32
    %c0_i32_0 = arith.constant 0 : i32
    %c0_i32_1 = arith.constant 0 : i32
    return %c0_i32, %c0_i32_0 : i32, i32
  }
  func.func @transform_6(%arg0: i32) -> (i32, i32) {
    %c0_i32 = arith.constant 0 : i32
    %c0_i32_0 = arith.constant 0 : i32
    %c0_i32_1 = arith.constant 0 : i32
    return %c0_i32, %c0_i32_0 : i32, i32
  }
  func.func @transform_7(%arg0: i32) -> (i32, i32) {
    %c0_i32 = arith.constant 0 : i32
    %c0_i32_0 = arith.constant 0 : i32
    %c0_i32_1 = arith.constant 0 : i32
    return %c0_i32, %c0_i32_0 : i32, i32
  }
  func.func @transform_8(%arg0: i32) -> (i32, i32) {
    %c0_i32 = arith.constant 0 : i32
    %c0_i32_0 = arith.constant 0 : i32
    %c0_i32_1 = arith.constant 0 : i32
    return %c0_i32, %c0_i32_0 : i32, i32
  }
  func.func @transform_9(%arg0: i32) -> (i32, i32) {
    %c0_i32 = arith.constant 0 : i32
    %c0_i32_0 = arith.constant 0 : i32
    %c0_i32_1 = arith.constant 0 : i32
    return %c0_i32, %c0_i32_0 : i32, i32
  }
  func.func @transform_10(%arg0: i32) -> (i32, i32) {
    %c0_i32 = arith.constant 0 : i32
    %c0_i32_0 = arith.constant 0 : i32
    %c0_i32_1 = arith.constant 0 : i32
    return %c0_i32, %c0_i32_0 : i32, i32
  }
  func.func @transform_11(%arg0: i32) -> (i32, i32) {
    %c0_i32 = arith.constant 0 : i32
    %c0_i32_0 = arith.constant 0 : i32
    %c0_i32_1 = arith.constant 0 : i32
    return %c0_i32, %c0_i32_0 : i32, i32
  }
  func.func @transform_12(%arg0: i32) -> (i32, i32) {
    %c0_i32 = arith.constant 0 : i32
    %c0_i32_0 = arith.constant 0 : i32
    %c0_i32_1 = arith.constant 0 : i32
    return %c0_i32, %c0_i32_0 : i32, i32
  }
  func.func @transform_13(%arg0: i32) -> (i32, i32) {
    %c0_i32 = arith.constant 0 : i32
    %c0_i32_0 = arith.constant 0 : i32
    %c0_i32_1 = arith.constant 0 : i32
    return %c0_i32, %c0_i32_0 : i32, i32
  }
  func.func @transform_14(%arg0: i32) -> (i32, i32) {
    %c0_i32 = arith.constant 0 : i32
    %c0_i32_0 = arith.constant 0 : i32
    %c0_i32_1 = arith.constant 0 : i32
    return %c0_i32, %c0_i32_0 : i32, i32
  }
  func.func @transform_15(%arg0: i32) -> (i32, i32) {
    %c0_i32 = arith.constant 0 : i32
    %c0_i32_0 = arith.constant 0 : i32
    %c0_i32_1 = arith.constant 0 : i32
    return %c0_i32, %c0_i32_0 : i32, i32
  }
  func.func @transform_16(%arg0: i32) -> (i32, i32, i32) {
    %c0_i32 = arith.constant 0 : i32
    %c0_i32_0 = arith.constant 0 : i32
    %c0_i32_1 = arith.constant 0 : i32
    return %arg0, %c0_i32, %c0_i32_0 : i32, i32, i32
  }
}

</mosaic_0001>

<bundles_post_ra>
// kernel: tpu_custom_call.1
= control target key start
LH: loop header
LB: loop body
LE: loop exit
PB: predicated region body
PF: predicated region fallthrough
CT: control target
= control target key end

     0   :  { %s3274_s0 = inlined_call_operand.vmem [shape: f32[2,16,256], index: 0, kind: input, shape index: {}]   ;;  %s3275_s1 = inlined_call_operand.vmem [shape: f32[3,256], index: 1, kind: input, shape index: {}]   ;;  %s3276_s2 = inlined_call_operand.vmem [shape: f32[32,16], index: 2, kind: input, shape index: {}]   ;;  %s3277_s3 = inlined_call_operand.vmem [shape: f32[32,1], index: 3, kind: input, shape index: {}]   ;;  %s3278_s4 = inlined_call_operand.vmem [shape: f32[32,9], index: 4, kind: input, shape index: {}]   ;;  %s3279_s5 = inlined_call_operand.vmem [shape: f32[32,1], index: 5, kind: input, shape index: {}]   ;;  %s3280_s6 = inlined_call_operand.vmem [shape: f32[32,8], index: 6, kind: input, shape index: {}]   ;;  %s3281_s7 = inlined_call_operand.vmem [shape: f32[1,8], index: 7, kind: input, shape index: {}]   ;;  %s3282_s8 = inlined_call_operand.vmem [shape: f32[32,8], index: 8, kind: input, shape index: {}]   ;;  %s3283_s9 = inlined_call_operand.vmem [shape: f32[32,1], index: 9, kind: input, shape index: {}]   ;;  %s3284_s10 = inlined_call_operand.vmem [shape: f32[32,2], index: 10, kind: input, shape index: {}]   ;;  %s3285_s11 = inlined_call_operand.vmem [shape: f32[32,2], index: 11, kind: input, shape index: {}]   ;;  %s3286_s12 = inlined_call_operand.vmem [shape: f32[32,2], index: 12, kind: input, shape index: {}]   ;;  %s3287_s13 = inlined_call_operand.vmem [shape: f32[32,2], index: 13, kind: input, shape index: {}]   ;;  %s3288_s14 = inlined_call_operand.vmem [shape: f32[16,32], index: 14, kind: input, shape index: {}]   ;;  %s3289_s15 = inlined_call_operand.vmem [shape: f32[16,1], index: 15, kind: input, shape index: {}]   ;;  %s3290_s16 = inlined_call_operand.hbm [shape: f32[2,16,256], index: 16, kind: output, shape index: {}]  }
   0x1   :  { %3299 = sst [smem:[#allocation9_spill]] %s3274_s0 }
   0x2   :  { %3300 = sst [smem:[#allocation10_spill]] %s3275_s1 }
   0x3   :  { %3301 = sst [smem:[#allocation11_spill]] %s3276_s2 }
   0x4   :  { %3302 = sst [smem:[#allocation12_spill]] %s3277_s3 }
   0x5   :  { %3303 = sst [smem:[#allocation13_spill]] %s3278_s4 }
   0x6   :  { %21 = vsyncpa [#allocation3], 0 }
   0x7   :  { %23 = vsyncpa [#allocation3 + $0x1], 0  ;;  %s2326_s21 = smov 0   ;;  %s2328_s22 = smov 0  }
   0x8   :  { %s2330_s23 = smov 0   ;;  %s2332_s24 = smov 0  }
   0x9 LB: > { %3304 = sst [smem:[#allocation5_spill]] %s2220_s23  ;;  %s2347_s25 = sadd.s32 4294967295, %s2224_s24   ;;  %s2224_s24 = sphi %s2332_s24, %s3335_s24   ;;  %s2220_s23 = sphi %s2330_s23, %s3332_s23   ;;  %s2216_s22 = sphi %s2328_s22, %s3334_s22   ;;  %s2212_s21 = sphi %s2326_s21, %s3333_s21  }
   0xa   : > { %s1956_s26 = sadd.s32 4294967294, %s2224_s24   ;;  %s2351_s27 = sadd.s32 1, %s2224_s24  }
   0xb   : > { %s377_s28 = sadd.s32 1, %s2220_s23  ;;  %s374_s29 = ssub.s32 %s2224_s24, %s2351_s27 }
   0xc   : > { %p387_p0 = scmp.ne.s32.totalorder %s2220_s23, %s2216_s22  ;;  %p375_p1 = scmp.eq.s32.totalorder %s374_s29, 0 }
   0xd   : > { %p388_p2 = scmp.eq.s32.totalorder %s2347_s25, 1  ;;  %p393_p3 = scmp.ne.s32.totalorder %s2216_s22, %s2212_s21 }
   0xe   : > { %p394_p4 = scmp.eq.s32.totalorder %s1956_s26, 1  ;;  %p1959_p7 = scmp.ge.s32.totalorder %s2224_s24, 1 }
   0xf   : > { %s2362_s30 = scalar_select %p375_p1, %s2220_s23, %s377_s28  }
  0x10   : > { %p2364_p5 = por %p388_p2, %p387_p0  ;;  %p2368_p6 = por %p394_p4, %p393_p3 }
  0x11   : > { %3305 = sst [smem:[#allocation6_spill]] %s2362_s30  ;;  %p465_p8 = scmp.lt.s32.totalorder %s2224_s24, 3 }
  0x13   : > { %p466_p9 = pnand %p1959_p7, %p465_p8 }
  0x15   : > { %469 = sbr.rel (%p466_p9) target bundleno = 1456 (0x5b0), region = 84 }
  0x1a   : > { %s3308_s4 = sld [smem:[#allocation13_spill]]  ;;  %v2226_v3 = vmov 7   ;;  %v3292_v4 = vmov 0   ;;  %p515_p10 = scmp.lt.s32.totalorder %s2347_s25, 1  ;;  %v2228_v9 = vmov 2   ;;  %vm552_vm0 = vcmask 130048  }
  0x1b   : > { %s3309_s3 = sld [smem:[#allocation12_spill]]  ;;  %2062 = vset.pattern.permute.xlu0 %v2226_v3  ;;  %2054 = vset.pattern.permute.xlu2 %v3292_v4  ;;  %v3294_v12 = vmov 1   ;;  %v2230_v17 = vmov 6   ;;  %v2231_v18 = vmov 8   ;;  %v2232_v20 = vmov 4   ;;  %s2235_s23 = smov 127  }
  0x1c   : > { %2053 = vset.pattern.permute.xlu1 %v3292_v4  ;;  %s516_s18 = scalar_select %p515_p10, %s2347_s25, 1  ;;  %v2233_v21 = vmov 3   ;;  %v2234_v26 = vmov 5   ;;  %vm659_vm1 = vcmask 7168   ;;  %vm706_vm2 = vcmask 1039360  }
  0x1d   : > { %s3310_s28 = sld [smem:[#allocation9_spill]]  ;;  %s2236_s30 = smov 1   ;;  %vm1078_vm3 = vcmask 916480   ;;  %vm1174_vm5 = vcmask 64512  }
  0x1e   : > { %s1997_s19 = sshll.u32 %s516_s18, 5  ;;  %s3311_s2 = sld [smem:[#allocation11_spill]] }
  0x1f   : > { %s3314_s1 = sld [smem:[#allocation10_spill]]  ;;  %s2237_s26 = smov 112  }
  0x20   : > { %v2377_v0 = vld [vmem:[%s3308_s4 + $0x8] sm:$0xff]  ;;  %v2382_v1 = vld [vmem:[%s3308_s4] sm:$0xff]  ;;  %v2417_v13 = vld [vmem:[%s3308_s4 + $0x10] sm:$0xff] }
  0x21   : > { %v530_v2 = vld [vmem:[%s3309_s3 + $0x10] sm:$0xff]  ;;  %995 = vperm.xlu0 %2062, %v2377_v0   ;;  %740 = vperm.xlu2 %2054, %v2382_v1   ;;  %v531_v8 = vld [vmem:[%s3309_s3 + $0x18] sm:$0xff]  ;;  %v528_v22 = vld [vmem:[%s3309_s3] sm:$0xff] }
  0x22   : > { %544 = vperm.xlu1 %2053, %v530_v2   ;;  %v2431_v15 = vld [vmem:[%s3308_s4 + $0x18] sm:$0xff]  ;;  %v529_v23 = vld [vmem:[%s3309_s3 + $0x8] sm:$0xff] }
  0x23   : > { %s2397_s29 = scalar_lea.vmem %s3310_s28, %s1997_s19  ;;  %s3298_s28 = smov 16  }
  0x24   : > { %v522_v5 = vld [vmem:[%s2397_s29 + $0x10] sm:$0xff]  ;;  %v523_v6 = vld [vmem:[%s2397_s29 + $0x18] sm:$0xff]  ;;  %v520_v7 = vld [vmem:[%s2397_s29] sm:$0xff] }
  0x25   : > { %579 = vmatpush.msra.mxu0 %v522_v5  ;;  %608 = vmatpush.msra.mxu1 %v523_v6  ;;  %v521_v10 = vld [vmem:[%s2397_s29 + $0x8] sm:$0xff]  ;;  %v524_v11 = vld [vmem:[%s3311_s2] sm:$0xff]  ;;  %v526_v16 = vld [vmem:[%s3311_s2 + $0x10] sm:$0xff] }
  0x26   : > { %v525_v14 = vld [vmem:[%s3311_s2 + $0x8] sm:$0xff]  ;;  %v527_v19 = vld [vmem:[%s3311_s2 + $0x18] sm:$0xff] }
  0x27   : > { %580 = vmatpush.msra.mxu0 %v520_v7  ;;  %609 = vmatpush.msra.mxu1 %v521_v10 }
  0x28   : > { %1963 = vmatmul.msk.f32.vlgmr.msra.gmra.mxu0 %vm552_vm0, %v524_v11  ;;  %1967 = vmatmul.msk.f32.vlgmr.msra.gmra.mxu1 %vm552_vm0, %v524_v11 }
  0x29   : > { %2063 = vset.pattern.permute.xlu0 %v2228_v9  ;;  %2056 = vset.pattern.permute.xlu2 %v3294_v12 }
  0x2a   : > { %549 = vperm.xlu1 %2053, %v531_v8   ;;  %799 = vperm.xlu0 %2063, %v2382_v1  }
  0x2b   : > { %771 = vperm.xlu2 %2056, %v2377_v0  }
  0x30   : > { %1964 = vmatmul.msk.f32.gmra.mxu0 %vm552_vm0, %v525_v14  ;;  %1968 = vmatmul.msk.f32.gmra.mxu1 %vm552_vm0, %v525_v14 }
  0x32   : > { %2055 = vset.pattern.permute.xlu1 %v3294_v12  ;;  %807 = vperm.xlu0 %2063, %v2417_v13  }
  0x33   : > { %775 = vperm.xlu2 %2056, %v2417_v13   ;;  %767 = vperm.xlu1 %2055, %v2382_v1  }
  0x38   : > { %1965 = vmatmul.msk.f32.gmra.mxu0 %vm552_vm0, %v526_v16  ;;  %1969 = vmatmul.msk.f32.gmra.mxu1 %vm552_vm0, %v526_v16 }
  0x3a   : > { %811 = vperm.xlu0 %2063, %v2431_v15  }
  0x3b   : > { %2059 = vset.pattern.permute.xlu2 %v2230_v17  ;;  %2057 = vset.pattern.permute.xlu1 %v3292_v4 }
  0x3c   : > { %967 = vperm.xlu2 %2059, %v2382_v1   ;;  %750 = vperm.xlu1 %2057, %v2417_v13  }
  0x40   : > { %1966 = vmatmul.msk.f32.gmra.mxu0 %vm552_vm0, %v527_v19  ;;  %1970 = vmatmul.msk.f32.gmra.mxu1 %vm552_vm0, %v527_v19 }
  0x42   : > { %2072 = vset.pattern.permute.xlu0 %v2231_v18 }
  0x43   : > { %1031 = vperm.xlu0 %2072, %v2417_v13  }
  0x44   : > { %2061 = vset.pattern.permute.xlu2 %v2226_v3  ;;  %2058 = vset.pattern.permute.xlu1 %v2228_v9 }
  0x45   : > { %991 = vperm.xlu2 %2061, %v2382_v1   ;;  %803 = vperm.xlu1 %2058, %v2377_v0  }
  0x4b   : > { %2077 = vset.pattern.permute.xlu0 %v2232_v20 }
  0x4c   : > { %899 = vperm.xlu0 %2077, %v2377_v0  }
  0x4d   : > { %2065 = vset.pattern.permute.xlu2 %v3294_v12  ;;  %2060 = vset.pattern.permute.xlu1 %v2230_v17 }
  0x4e   : > { %779 = vperm.xlu2 %2065, %v2431_v15   ;;  %971 = vperm.xlu1 %2060, %v2377_v0  }
  0x54   : > { %2080 = vset.pattern.permute.xlu0 %v2233_v21 }
  0x55   : > { %883 = vperm.xlu0 %2080, %v2431_v15  }
  0x56   : > { %2067 = vset.pattern.permute.xlu2 %v2226_v3  ;;  %2064 = vset.pattern.permute.xlu1 %v3292_v4 }
  0x57   : > { %999 = vperm.xlu2 %2067, %v2417_v13   ;;  %755 = vperm.xlu1 %2064, %v2431_v15  }
  0x5d   : > { %2081 = vset.pattern.permute.xlu0 %v3292_v4 }
  0x5e   : > { %534 = vperm.xlu0 %2081, %v528_v22  }
  0x5f   : > { %2069 = vset.pattern.permute.xlu2 %v2231_v18  ;;  %2066 = vset.pattern.permute.xlu1 %v2230_v17 }
  0x60   : > { %1027 = vperm.xlu2 %2069, %v2377_v0   ;;  %975 = vperm.xlu1 %2066, %v2417_v13  }
  0x66   : > { %539 = vperm.xlu0 %2081, %v529_v23  }
  0x68   : > { %2071 = vset.pattern.permute.xlu2 %v2226_v3  ;;  %2068 = vset.pattern.permute.xlu1 %v2231_v18 }
  0x69   : > { %1003 = vperm.xlu2 %2071, %v2431_v15   ;;  %1023 = vperm.xlu1 %2068, %v2382_v1  }
  0x6e   : > { %745 = vperm.xlu0 %2081, %v2377_v0  }
  0x71   : > { %2074 = vset.pattern.permute.xlu2 %v2233_v21  ;;  %2070 = vset.pattern.permute.xlu1 %v2230_v17 }
  0x72   : > { %871 = vperm.xlu2 %2074, %v2382_v1   ;;  %979 = vperm.xlu1 %2070, %v2431_v15  }
  0x7a   : > { %2076 = vset.pattern.permute.xlu2 %v2232_v20  ;;  %2073 = vset.pattern.permute.xlu1 %v2231_v18 }
  0x7b   : > { %895 = vperm.xlu2 %2076, %v2382_v1   ;;  %1035 = vperm.xlu1 %2073, %v2431_v15   ;;  %v2477_v24 = vpop.permute.xlu2 %740 }
  0x83   : > { %903 = vperm.xlu2 %2076, %v2417_v13   ;;  %2075 = vset.pattern.permute.xlu1 %v2233_v21 }
  0x84   : > { %875 = vperm.xlu1 %2075, %v2377_v0  }
  0x85   : > { %v2481_v25 = vpop.permute.xlu2 %771 }
  0x8b   : > { %2079 = vset.pattern.permute.xlu2 %v2234_v26 }
  0x8c   : > { %931 = vperm.xlu2 %2079, %v2377_v0   ;;  %879 = vperm.xlu1 %2075, %v2417_v13  }
  0x8d   : > { %v776_v27 = vpop.permute.xlu2 %775 }
  0x93   : > { %v2485_v28 = vpop.permute.xlu0 %995 }
  0x94   : > { %935 = vperm.xlu2 %2079, %v2417_v13   ;;  %2078 = vset.pattern.permute.xlu1 %v2234_v26  ;;  %v545_v40 = vpop.permute.xlu1 %544 }
  0x95   : > { %927 = vperm.xlu1 %2078, %v2382_v1  }
  0x96   : > { %v2489_v29 = vpop.permute.xlu2 %967 }
  0x9c   : > { %v2491_v30 = vpop.permute.xlu0 %799  ;;  %v550_v48 = vpop.permute.xlu1 %549 }
  0x9d   : > { %2082 = vset.pattern.permute.xlu1 %v2232_v20 }
  0x9e   : > { %907 = vperm.xlu1 %2082, %v2431_v15  }
  0x9f   : > { %v992_v31 = vpop.permute.xlu2 %991 }
  0xa4   : > { %v2494_v32 = vpop.permute.xlu0 %807 }
  0xa5   : > { %v582_v34 = vpop.f32.mrf.mxu0  ;;  %v611_v35 = vpop.f32.mrf.mxu1 }
  0xa6   : > { %2083 = vset.pattern.permute.xlu1 %v3292_v4  ;;  %v768_v56 = vpop.permute.xlu1 %767 }
  0xa8   : > { %v2497_v33 = vpop.permute.xlu2 %779 }
  0xac   : > { %v2499_v36 = vpop.permute.xlu0 %811 }
  0xad   : > { %v585_v38 = vpop.f32.mrf.mxu0  ;;  %v614_v39 = vpop.f32.mrf.mxu1 }
  0xae   : > { %v2519_v60 = vpop.permute.xlu1 %750 }
  0xb1   : > { %v1000_v37 = vpop.permute.xlu2 %999 }
  0xb5   : > { %v2501_v41 = vpop.permute.xlu0 %1031  ;;  %v588_v43 = vpop.f32.mrf.mxu0 }
  0xb6   : > { %v589_v44 = vadd.f32 %v588_v43, %v545_v40  ;;  %v617_v45 = vpop.f32.mrf.mxu1 }
  0xb7   : > { %v618_v46 = vadd.f32 %v617_v45, %v545_v40  ;;  %v2535_v13 = vpop.permute.xlu1 %803  ;;  %v1104_v45 = vld [vmem:[%s3279_s5 + $0x8] sm:$0xff] }
  0xb8   : > { %v627_v47 = vmax.f32 %v589_v44, 0.0 }
  0xb9   : > { %v628_v49 = vmax.f32 %v618_v46, 0.0 }
  0xba   : > { %v2503_v42 = vpop.permute.xlu2 %1027  ;;  %v2505_v51 = vmul.f32 %v776_v27, %v627_v47  ;;  %v2507_v52 = vmul.f32 %v1000_v37, %v627_v47 }
  0xbb   : > { %v2509_v53 = vmul.f32 %v776_v27, %v628_v49  ;;  %v2511_v54 = vmul.f32 %v1000_v37, %v628_v49 }
  0xbe   : > { %v900_v50 = vpop.permute.xlu0 %899  ;;  %v620_v22 = vpop.f32.mrf.mxu1 }
  0xbf   : > { %v621_v26 = vadd.f32 %v620_v22, %v550_v48 }
  0xc0   : > { %v2556_v23 = vpop.permute.xlu1 %971 }
  0xc1   : > { %v2563_v27 = vmax.f32 %v621_v26, 0.0 }
  0xc3   : > { %v2513_v55 = vpop.permute.xlu2 %1003 }
  0xc4   : > { %3312 = vst [vmem:[#allocation7_spill] sm:$0xff] %v2513_v55 }
  0xc7   : > { %v2515_v57 = vpop.permute.xlu0 %883 }
  0xcc   : > { %v2517_v58 = vpop.permute.xlu2 %871 }
  0xd0   : > { %v535_v59 = vpop.permute.xlu0 %534 }
  0xd1   : > { %v583_v61 = vadd.f32 %v582_v34, %v535_v59  ;;  %v612_v62 = vadd.f32 %v611_v35, %v535_v59  ;;  %v2569_v35 = vpop.permute.xlu1 %755 }
  0xd3   : > { %v623_v63 = vmax.f32 %v583_v61, 0.0  ;;  %v624_v0 = vmax.f32 %v612_v62, 0.0 }
  0xd5   : > { %v896_v1 = vpop.permute.xlu2 %895  ;;  %690 = vrot.lane.b32.xlu1 %v623_v63, %s2235_s23  ;;  %643 = vrot.lane.b32.xlu2 %v623_v63, %s2236_s30  ;;  %v2527_v5 = vmul.f32 %v992_v31, %v624_v0  ;;  %v2529_v6 = vmul.f32 %v768_v56, %v624_v0  ;;  %v2531_v7 = vmul.f32 %v992_v31, %v623_v63  ;;  %v591_v31 = vpop.f32.mrf.mxu0 }
  0xd6   : > { %v2521_v2 = vmul.f32 %v896_v1, %v623_v63  ;;  %v2523_v3 = vmul.f32 %v896_v1, %v624_v0  ;;  %v2533_v8 = vmul.f32 %v768_v56, %v623_v63  ;;  %v592_v34 = vadd.f32 %v591_v31, %v550_v48  ;;  %v676_v48 = vld [vmem:[%s3314_s1] ss:$4 sm:$0x3] }
  0xd7   : > { %v2612_v1 = vperm.slane %v676_v48, 1 }
  0xd8   : > { %v540_v9 = vpop.permute.xlu0 %539  ;;  %v2571_v37 = vmax.f32 %v592_v34, 0.0 }
  0xd9   : > { %v586_v10 = vadd.f32 %v585_v38, %v540_v9  ;;  %v615_v11 = vadd.f32 %v614_v39, %v540_v9  ;;  %v2577_v38 = vpop.permute.xlu1 %975 }
  0xdb   : > { %v2537_v14 = vmax.f32 %v586_v10, 0.0  ;;  %v2539_v16 = vmax.f32 %v615_v11, 0.0 }
  0xdd   : > { %v904_v17 = vpop.permute.xlu2 %903  ;;  %647 = vrot.lane.b32.xlu0 %v2537_v14, %s2236_s30  ;;  %649 = vrot.lane.b32.xlu1 %v2539_v16, %s2236_s30  ;;  %v2551_v20 = vmul.f32 %v900_v50, %v2537_v14  ;;  %v2554_v21 = vmul.f32 %v900_v50, %v2539_v16  ;;  %v2606_v50 = vperm.slane %v676_v48, 0 }
  0xde   : > { %v2541_v18 = vmul.f32 %v904_v17, %v627_v47  ;;  %v2543_v19 = vmul.f32 %v904_v17, %v628_v49  ;;  %645 = vrot.lane.b32.xlu2 %v624_v0, %s2236_s30  ;;  %v1971_v17 = vld [vmem:[%s3314_s1 + $0x2] ss:$4 sm:$0x3]  ;;  %s512_s1 = sand.u32 1, %s2216_s22  }
  0xdf   : > { %v2620_v26 = vperm.slane %v1971_v17, 1 }
  0xe1   : > { %v1024_v39 = vpop.permute.xlu1 %1023 }
  0xe5   : > { %694 = vrot.lane.b32.xlu0 %v2537_v14, %s2235_s23  ;;  %696 = vrot.lane.b32.xlu1 %v2539_v16, %s2235_s23 }
  0xe6   : > { %692 = vrot.lane.b32.xlu2 %v624_v0, %s2235_s23  ;;  %v2589_v44 = vpop.permute.xlu2 %931 }
  0xe9   : > { %v2584_v40 = vpop.permute.xlu1 %979 }
  0xed   : > { %653 = vrot.lane.b32.xlu0 %v628_v49, %s2236_s30  ;;  %657 = vrot.lane.b32.xlu1 %v2563_v27, %s2236_s30 }
  0xee   : > { %651 = vrot.lane.b32.xlu2 %v627_v47, %s2236_s30 }
  0xf1   : > { %v2587_v43 = vpop.permute.xlu1 %1035 }
  0xf2   : > { %3313 = vst [vmem:[#allocation8_spill] sm:$0xff] %v2587_v43  ;;  %v746_v43 = vpop.permute.xlu0 %745 }
  0xf5   : > { %700 = vrot.lane.b32.xlu0 %v628_v49, %s2235_s23  ;;  %702 = vrot.lane.b32.xlu1 %v2571_v37, %s2235_s23 }
  0xf6   : > { %698 = vrot.lane.b32.xlu2 %v627_v47, %s2235_s23  ;;  %v1103_v47 = vld [vmem:[%s3279_s5] sm:$0xff] }
  0xf9   : > { %v2594_v46 = vpop.permute.xlu1 %875 }
  0xfd   : > { %655 = vrot.lane.b32.xlu0 %v2571_v37, %s2236_s30  ;;  %1109 = vperm.xlu1 %2083, %v1103_v47   ;;  %s1960_s30 = sshll.u32 %s512_s1, 5 }
  0xfe   : > { %704 = vrot.lane.b32.xlu2 %v2563_v27, %s2235_s23  ;;  %s514_s20 = scalar_lea.vmem [#allocation2], %s1960_s30 }
  0xff   : > { %s1891_s23 = sshll.u32 %s514_s20, 4  ;;  %s1892_s23 = int_to_ptr.vmem [resolvable:$true] %s1891_s23 }
 0x101   : > { %v2604_v49 = vpop.permute.xlu1 %879 }
 0x106   : > { %939 = vperm.xlu2 %2079, %v2431_v15   ;;  %v2599_v15 = vpop.permute.xlu2 %935 }
 0x109   : > { %v928_v63 = vpop.permute.xlu1 %927 }
 0x10e   : > { %2084 = vset.pattern.permute.xlu2 %v3292_v4 }
 0x10f   : > { %1114 = vperm.xlu2 %2084, %v1104_v45  }
 0x111   : > { %v2623_v34 = vpop.permute.xlu1 %907 }
 0x12f   : > { %v644_v56 = vpop.permute.xlu2 %643 }
 0x130   : > { %v672_v59 = vsel %vm659_vm1, 0.0, %v644_v56 }
 0x131   : > { %v682_v61 = vmul.f32 %v2606_v50, %v672_v59 }
 0x133   : > { %v886_v62 = vmul.f32 %v2517_v58, %v682_v61  ;;  %v758_v55 = vmul.f32 %v2477_v24, %v682_v61 }
 0x135   : > { %v918_v0 = vadd.f32 %v2521_v2, %v886_v62 }
 0x138   : > { %v646_v9 = vpop.permute.xlu2 %645 }
 0x139   : > { %v660_v10 = vsel %vm659_vm1, %v644_v56, %v646_v9 }
 0x13a   : > { %v683_v11 = vmul.f32 %v2612_v1, %v660_v10 }
 0x13c   : > { %v887_v22 = vmul.f32 %v2517_v58, %v683_v11  ;;  %v983_v2 = vmul.f32 %v2489_v29, %v683_v11  ;;  %v759_v45 = vmul.f32 %v2477_v24, %v683_v11 }
 0x13e   : > { %v919_v31 = vadd.f32 %v2523_v3, %v887_v22  ;;  %v1015_v59 = vadd.f32 %v2527_v5, %v983_v2  ;;  %v791_v58 = vadd.f32 %v2529_v6, %v759_v45  ;;  %v2632_v3 = vperm.slane %v1971_v17, 0 }
 0x13f   : > { %v982_v22 = vmul.f32 %v2489_v29, %v682_v61  ;;  %v790_v61 = vadd.f32 %v2533_v8, %v758_v55 }
 0x140   : > { %v693_v47 = vpop.permute.xlu2 %692 }
 0x141   : > { %v719_v48 = vsel %vm706_vm2, %v693_v47, 0.0  ;;  %v1014_v2 = vadd.f32 %v2531_v7, %v982_v22 }
 0x142   : > { %v731_v56 = vmul.f32 %v2620_v26, %v719_v48 }
 0x144   : > { %v1039_v62 = vmul.f32 %v1024_v39, %v731_v56  ;;  %v815_v9 = vmul.f32 %v2491_v30, %v731_v56  ;;  %v943_v10 = vmul.f32 %v928_v63, %v731_v56 }
 0x146   : > { %v1047_v4 = vadd.f32 %v1039_v62, %v1015_v59  ;;  %v823_v12 = vadd.f32 %v815_v9, %v791_v58  ;;  %v2635_v11 = vadd.f32 %v943_v10, %v919_v31 }
 0x147   : > { %v691_v48 = vpop.permute.xlu1 %690 }
 0x148   : > { %v707_v5 = vsel %vm706_vm2, %v691_v48, %v693_v47  ;;  %1064 = vrot.lane.b32.xlu0 %v1047_v4, %s2237_s26  ;;  %840 = vrot.lane.b32.xlu2 %v823_v12, %s3298_s28  ;;  %v652_v6 = vpop.permute.xlu2 %651 }
 0x149   : > { %v730_v17 = vmul.f32 %v2632_v3, %v707_v5  ;;  %v674_v29 = vsel %vm659_vm1, 0.0, %v652_v6 }
 0x14a   : > { %v2644_v31 = vmul.f32 %v2606_v50, %v674_v29 }
 0x14b   : > { %v1038_v24 = vmul.f32 %v1024_v39, %v730_v17  ;;  %v814_v45 = vmul.f32 %v2491_v30, %v730_v17  ;;  %v942_v47 = vmul.f32 %v928_v63, %v730_v17 }
 0x14c   : > { %v890_v4 = vmul.f32 %v2604_v49, %v2644_v31 }
 0x14d   : > { %v1046_v12 = vadd.f32 %v1038_v24, %v1014_v2  ;;  %v822_v56 = vadd.f32 %v814_v45, %v790_v61  ;;  %v2651_v59 = vadd.f32 %v942_v47, %v918_v0  ;;  %v784_v45 = vmul.f32 %v2481_v25, %v2537_v14 }
 0x14e   : > { %v2654_v62 = vadd.f32 %v2541_v18, %v890_v4 }
 0x14f   : > { %v648_v58 = vpop.permute.xlu0 %647  ;;  %v650_v9 = vpop.permute.xlu1 %649  ;;  %838 = vrot.lane.b32.xlu1 %v822_v56, %s3298_s28 }
 0x150   : > { %v673_v7 = vsel %vm659_vm1, 0.0, %v648_v58  ;;  %v661_v55 = vsel %vm659_vm1, %v648_v58, %v650_v9  ;;  %v699_v30 = vpop.permute.xlu2 %698  ;;  %1062 = vrot.lane.b32.xlu2 %v1046_v12, %s2237_s26 }
 0x151   : > { %v684_v8 = vmul.f32 %v2606_v50, %v673_v7  ;;  %v685_v39 = vmul.f32 %v2612_v1, %v661_v55 }
 0x153   : > { %v888_v63 = vmul.f32 %v2594_v46, %v684_v8  ;;  %v889_v18 = vmul.f32 %v2594_v46, %v685_v39  ;;  %v760_v10 = vmul.f32 %v746_v43, %v684_v8  ;;  %v761_v22 = vmul.f32 %v746_v43, %v685_v39 }
 0x154   : > { %v985_v5 = vmul.f32 %v2556_v23, %v685_v39  ;;  %v785_v46 = vmul.f32 %v2481_v25, %v2539_v16 }
 0x155   : > { %v920_v0 = vadd.f32 %v2551_v20, %v888_v63  ;;  %v921_v48 = vadd.f32 %v2554_v21, %v889_v18  ;;  %v1009_v21 = vmul.f32 %v2485_v28, %v2539_v16  ;;  %v792_v47 = vadd.f32 %v784_v45, %v760_v10 }
 0x156   : > { %v793_v4 = vadd.f32 %v785_v46, %v761_v22 }
 0x157   : > { %v695_v17 = vpop.permute.xlu0 %694  ;;  %v697_v29 = vpop.permute.xlu1 %696  ;;  %v1017_v56 = vadd.f32 %v1009_v21, %v985_v5 }
 0x158   : > { %v708_v2 = vsel %vm706_vm2, %v695_v17, %v697_v29  ;;  %v720_v24 = vsel %vm706_vm2, %v697_v29, 0.0  ;;  %v705_v61 = vpop.permute.xlu2 %704 }
 0x159   : > { %v732_v20 = vmul.f32 %v2632_v3, %v708_v2  ;;  %v733_v43 = vmul.f32 %v2620_v26, %v720_v24  ;;  %v722_v7 = vsel %vm706_vm2, %v705_v61, 0.0  ;;  %v1008_v2 = vmul.f32 %v2485_v28, %v2537_v14 }
 0x15a   : > { %v2688_v10 = vmul.f32 %v2620_v26, %v722_v7 }
 0x15b   : > { %v816_v12 = vmul.f32 %v2535_v13, %v732_v20  ;;  %v1041_v58 = vmul.f32 %v2503_v42, %v733_v43  ;;  %v817_v9 = vmul.f32 %v2535_v13, %v733_v43  ;;  %v944_v25 = vmul.f32 %v2589_v44, %v732_v20 }
 0x15c   : > { %v945_v55 = vmul.f32 %v2589_v44, %v733_v43  ;;  %v984_v13 = vmul.f32 %v2556_v23, %v684_v8  ;;  %v1040_v24 = vmul.f32 %v2503_v42, %v732_v20  ;;  %v986_v8 = vmul.f32 %v2577_v38, %v2644_v31 }
 0x15d   : > { %v824_v39 = vadd.f32 %v816_v12, %v792_v47  ;;  %v1049_v63 = vadd.f32 %v1041_v58, %v1017_v56  ;;  %v825_v18 = vadd.f32 %v817_v9, %v793_v4  ;;  %v2683_v17 = vadd.f32 %v944_v25, %v920_v0 }
 0x15e   : > { %v2685_v16 = vadd.f32 %v945_v55, %v921_v48  ;;  %v1016_v46 = vadd.f32 %v1008_v2, %v984_v13 }
 0x15f   : > { %v654_v22 = vpop.permute.xlu0 %653  ;;  %v658_v5 = vpop.permute.xlu1 %657  ;;  %842 = vrot.lane.b32.xlu0 %v824_v39, %s3298_s28  ;;  %1068 = vrot.lane.b32.xlu2 %v1049_v63, %s2237_s26  ;;  %v916_v63 = vmul.f32 %v2623_v34, %v2571_v37 }
 0x160   : > { %v662_v44 = vsel %vm659_vm1, %v652_v6, %v654_v22  ;;  %v940_v29 = vpop.permute.xlu2 %939  ;;  %844 = vrot.lane.b32.xlu1 %v825_v18, %s3298_s28  ;;  %v762_v6 = vmul.f32 %v2519_v60, %v2644_v31  ;;  %v1048_v43 = vadd.f32 %v1040_v24, %v1016_v46  ;;  %v789_v22 = vmul.f32 %v2497_v33, %v2563_v27 }
 0x161   : > { %v687_v0 = vmul.f32 %v2612_v1, %v662_v44  ;;  %v2697_v48 = vmul.f32 %v940_v29, %v2688_v10 }
 0x162   : > { %v794_v31 = vadd.f32 %v2505_v51, %v762_v6  ;;  %v3315_v6 = vld [vmem:[#allocation7_spill] sm:$0xff] }
 0x163   : > { %v891_v45 = vmul.f32 %v2604_v49, %v687_v0  ;;  %v763_v21 = vmul.f32 %v2519_v60, %v687_v0  ;;  %v1018_v60 = vadd.f32 %v2507_v52, %v986_v8  ;;  %v1013_v8 = vmul.f32 %v3315_v6, %v2563_v27 }
 0x165   : > { %v923_v23 = vadd.f32 %v2543_v19, %v891_v45  ;;  %v795_v56 = vadd.f32 %v2509_v53, %v763_v21 }
 0x167   : > { %v701_v47 = vpop.permute.xlu0 %700  ;;  %v703_v4 = vpop.permute.xlu1 %702 }
 0x168   : > { %v709_v28 = vsel %vm706_vm2, %v699_v30, %v701_v47  ;;  %v721_v42 = vsel %vm706_vm2, %v701_v47, 0.0  ;;  %v710_v14 = vsel %vm706_vm2, %v703_v4, %v705_v61  ;;  %1066 = vrot.lane.b32.xlu1 %v1048_v43, %s2237_s26  ;;  %v3316_v4 = vld [vmem:[#allocation8_spill] sm:$0xff] }
 0x169   : > { %v734_v19 = vmul.f32 %v2632_v3, %v709_v28  ;;  %v735_v49 = vmul.f32 %v2620_v26, %v721_v42  ;;  %v736_v20 = vmul.f32 %v2632_v3, %v710_v14  ;;  %v987_v3 = vmul.f32 %v2577_v38, %v687_v0 }
 0x16a   : > { %v1045_v28 = vmul.f32 %v3316_v4, %v2688_v10 }
 0x16b   : > { %v818_v12 = vmul.f32 %v2494_v32, %v734_v19  ;;  %v1042_v30 = vmul.f32 %v2501_v41, %v734_v19  ;;  %v819_v61 = vmul.f32 %v2494_v32, %v735_v49  ;;  %v946_v58 = vmul.f32 %v2599_v15, %v734_v19 }
 0x16c   : > { %v947_v9 = vmul.f32 %v2599_v15, %v735_v49  ;;  %v948_v55 = vmul.f32 %v940_v29, %v736_v20  ;;  %v1043_v15 = vmul.f32 %v2501_v41, %v735_v49  ;;  %v1019_v18 = vadd.f32 %v2511_v54, %v987_v3  ;;  %v1105_v54 = vld [vmem:[%s3279_s5 + $0x10] sm:$0xff] }
 0x16d   : > { %v826_v7 = vadd.f32 %v818_v12, %v794_v31  ;;  %v1050_v26 = vadd.f32 %v1042_v30, %v1018_v60  ;;  %v827_v25 = vadd.f32 %v819_v61, %v795_v56  ;;  %v2726_v51 = vadd.f32 %v946_v58, %v2654_v62 }
 0x16e   : > { %v2728_v52 = vadd.f32 %v947_v9, %v923_v23  ;;  %v820_v43 = vmul.f32 %v2499_v36, %v736_v20 }
 0x16f   : > { %v656_v39 = vpop.permute.xlu0 %655  ;;  %846 = vrot.lane.b32.xlu0 %v826_v7, %s3298_s28  ;;  %1070 = vrot.lane.b32.xlu2 %v1050_v26, %s2237_s26 }
 0x170   : > { %v663_v32 = vsel %vm659_vm1, %v656_v39, %v658_v5  ;;  %v675_v53 = vsel %vm659_vm1, 0.0, %v656_v39  ;;  %848 = vrot.lane.b32.xlu1 %v827_v25, %s3298_s28  ;;  %v917_v5 = vmul.f32 %v2623_v34, %v2563_v27  ;;  %v788_v34 = vmul.f32 %v2497_v33, %v2571_v37 }
 0x171   : > { %v688_v38 = vmul.f32 %v2606_v50, %v675_v53  ;;  %v689_v62 = vmul.f32 %v2612_v1, %v663_v32  ;;  %v1051_v50 = vadd.f32 %v1043_v15, %v1019_v18  ;;  %v821_v1 = vmul.f32 %v2499_v36, %v2688_v10  ;;  %v1106_v36 = vld [vmem:[%s3279_s5 + $0x18] sm:$0xff]  ;;  %v1110_v10 = vpop.permute.xlu1 %1109 }
 0x172   : > { %v1044_v27 = vmul.f32 %v3316_v4, %v736_v20 }
 0x173   : > { %v765_v13 = vmul.f32 %v2569_v35, %v689_v62  ;;  %v892_v44 = vmul.f32 %v2515_v57, %v688_v38  ;;  %v893_v41 = vmul.f32 %v2515_v57, %v689_v62  ;;  %v764_v29 = vmul.f32 %v2569_v35, %v688_v38 }
 0x174   : > { %v989_v45 = vmul.f32 %v2584_v40, %v689_v62  ;;  %v988_v21 = vmul.f32 %v2584_v40, %v688_v38  ;;  %v1115_v40 = vpop.permute.xlu2 %1114 }
 0x175   : > { %v797_v0 = vadd.f32 %v789_v22, %v765_v13  ;;  %v924_v2 = vadd.f32 %v916_v63, %v892_v44  ;;  %v925_v24 = vadd.f32 %v917_v5, %v893_v41  ;;  %v796_v35 = vadd.f32 %v788_v34, %v764_v29 }
 0x176   : > { %v1021_v33 = vadd.f32 %v1013_v8, %v989_v45 }
 0x177   : > { %1072 = vrot.lane.b32.xlu0 %v1051_v50, %s2237_s26  ;;  %v829_v57 = vadd.f32 %v821_v1, %v797_v0  ;;  %1119 = vperm.xlu2 %2084, %v1105_v54   ;;  %v2758_v46 = vadd.f32 %v948_v55, %v924_v2  ;;  %v2761_v23 = vadd.f32 %v2697_v48, %v925_v24 }
 0x178   : > { %v828_v47 = vadd.f32 %v820_v43, %v796_v35  ;;  %v1053_v42 = vadd.f32 %v1045_v28, %v1021_v33  ;;  %v1012_v48 = vmul.f32 %v3315_v6, %v2571_v37 }
 0x179   : > { %852 = vrot.lane.b32.xlu1 %v829_v57, %s3298_s28 }
 0x17a   : > { %v1020_v14 = vadd.f32 %v1012_v48, %v988_v21 }
 0x17c   : > { %v1052_v19 = vadd.f32 %v1044_v27, %v1020_v14 }
 0x17f   : > { %850 = vrot.lane.b32.xlu0 %v828_v47, %s3298_s28 }
 0x181   : > { %1076 = vrot.lane.b32.xlu1 %v1053_v42, %s2237_s26 }
 0x187   : > { %1074 = vrot.lane.b32.xlu0 %v1052_v19, %s2237_s26  ;;  %s1998_s26 = sshll.u32 %s2347_s25, 5  ;;  %s1879_s25 = scalar_lea.sflag [#allocation3], %s512_s1 }
 0x188   : > { %s1890_s19 = scalar_lea.hbm %s3290_s16, %s1998_s26 }
 0x189   : > { %s1893_s30 = sshll.u32 %s1890_s19, 4  ;;  %s2182_s19 = scalar_lea.hbm %s3290_s16, 64  ;;  %s1894_s30 = int_to_ptr.hbm [resolvable:$true] %s1893_s30 }
 0x18a   : > { %s2176_s2 = sshra.s32 %s1894_s30, 4  ;;  %s2177_s2 = int_to_ptr.hbm [resolvable:$true] %s2176_s2 }
 0x18b   : > { %s2178_s28 = scalar_lea.hbm %s2177_s2, 32  ;;  %p2183_p0 = scmp.lt.s32.totalorder %s2177_s2, %s3290_s16 }
 0x18c   : > { %p2179_p11 = scmp.ne.s32.totalorder %s2177_s2, %s2178_s28  ;;  %p2184_p1 = scmp.lt.s32.totalorder %s2182_s19, %s2178_s28 }
 0x18e   : > { %p2180_p12 = pnand %p2179_p11, %p2364_p5  ;;  %p2185_p2 = por %p2184_p1, %p2183_p0 }
 0x18f   : > { %1124 = vperm.xlu0 %2081, %v1106_v36  }
 0x190   : > { %p2181_p13 = pneg %p2180_p12 }
 0x192   : > { %p2186_p3 = pnand %p2185_p2, %p2181_p13 }
 0x1a2   : > { %v841_v49 = vpop.permute.xlu2 %840 }
 0x1aa   : > { %v1063_v30 = vpop.permute.xlu2 %1062 }
 0x1b9   : > { %v1069_v53 = vpop.permute.xlu2 %1068 }
 0x1ba   : > { %v1065_v31 = vpop.permute.xlu0 %1064  ;;  %v1092_v38 = vsel %vm1078_vm3, %v1069_v53, 0.0 }
 0x1bb   : > { %v1079_v61 = vsel %vm1078_vm3, %v1063_v30, %v1065_v31  ;;  %v1091_v58 = vsel %vm1078_vm3, %v1065_v31, 0.0 }
 0x1c1   : > { %v839_v60 = vpop.permute.xlu1 %838 }
 0x1c2   : > { %v854_v37 = vsel %vm552_vm0, %v839_v60, %v841_v49  ;;  %v866_v12 = vsel %vm552_vm0, 0.0, %v839_v60 }
 0x1c3   : > { %v958_v20 = vadd.f32 %v2651_v59, %v866_v12  ;;  %v959_v56 = vadd.f32 %v2635_v11, %v854_v37 }
 0x1c5   : > { %v1095_v9 = vadd.f32 %v1079_v61, %v958_v20  ;;  %v1096_v7 = vadd.f32 %v1091_v58, %v959_v56  ;;  %v2239_v56 = vmov 256.0  }
 0x1c6   : > { %2092 = vrcp.f32 %v2239_v56 }
 0x1c7   : > { %v2785_v26 = vadd.f32 %v1110_v10, %v1095_v9  ;;  %v2787_v25 = vadd.f32 %v1110_v10, %v1096_v7 }
 0x1c9   : > { %v1135_v3 = vmax.f32 %v2785_v26, 0.0  ;;  %v1136_v55 = vmax.f32 %v2787_v25, 0.0 }
 0x1cb   : > { %v1143_v59 = vadd.f32 %v1136_v55, %v1135_v3 }
 0x1cd   : > { %1144 = vadd.xlane.f32.xlu1 %v1143_v59 }
 0x1d1   : > { %v843_v11 = vpop.permute.xlu0 %842 }
 0x1d2   : > { %v845_v39 = vpop.permute.xlu1 %844  ;;  %v867_v62 = vsel %vm552_vm0, 0.0, %v843_v11 }
 0x1d3   : > { %v855_v32 = vsel %vm552_vm0, %v843_v11, %v845_v39  ;;  %v960_v18 = vadd.f32 %v2683_v17, %v867_v62  ;;  %v1071_v17 = vpop.permute.xlu2 %1070 }
 0x1d4   : > { %v961_v15 = vadd.f32 %v2685_v16, %v855_v32 }
 0x1d6   : > { %v1098_v63 = vadd.f32 %v1092_v38, %v961_v15  ;;  %v1167_v15 = vld [vmem:[%s3280_s6 + $0x8] sm:$0xff] }
 0x1d8   : > { %v2801_v44 = vadd.f32 %v1115_v40, %v1098_v63  ;;  %v1166_v63 = vld [vmem:[%s3280_s6] sm:$0xff] }
 0x1da   : > { %v1067_v22 = vpop.permute.xlu1 %1066  ;;  %v1138_v1 = vmax.f32 %v2801_v44, 0.0 }
 0x1db   : > { %v1080_v5 = vsel %vm1078_vm3, %v1067_v22, %v1069_v53  ;;  %v1120_v43 = vpop.permute.xlu2 %1119 }
 0x1dc   : > { %v1097_v13 = vadd.f32 %v1080_v5, %v960_v18  ;;  %v1168_v18 = vld [vmem:[%s3280_s6 + $0x10] sm:$0xff] }
 0x1de   : > { %v2803_v41 = vadd.f32 %v1115_v40, %v1097_v13 }
 0x1e0   : > { %v1137_v50 = vmax.f32 %v2803_v41, 0.0 }
 0x1e1   : > { %v847_v16 = vpop.permute.xlu0 %846 }
 0x1e2   : > { %v1146_v54 = vadd.f32 %v1138_v1, %v1137_v50  ;;  %v849_v29 = vpop.permute.xlu1 %848  ;;  %v868_v0 = vsel %vm552_vm0, 0.0, %v847_v16 }
 0x1e3   : > { %v856_v2 = vsel %vm552_vm0, %v847_v16, %v849_v29  ;;  %v962_v24 = vadd.f32 %v2726_v51, %v868_v0 }
 0x1e4   : > { %1147 = vadd.xlane.f32.xlu2 %v1146_v54  ;;  %v963_v34 = vadd.f32 %v2728_v52, %v856_v2  ;;  %v1169_v54 = vld [vmem:[%s3280_s6 + $0x18] sm:$0xff] }
 0x1e9   : > { %v1073_v45 = vpop.permute.xlu0 %1072 }
 0x1ea   : > { %v1081_v57 = vsel %vm1078_vm3, %v1071_v17, %v1073_v45  ;;  %v1093_v35 = vsel %vm1078_vm3, %v1073_v45, 0.0 }
 0x1eb   : > { %v1099_v6 = vadd.f32 %v1081_v57, %v962_v24  ;;  %v1100_v8 = vadd.f32 %v1093_v35, %v963_v34  ;;  %v853_v28 = vpop.permute.xlu1 %852 }
 0x1ed   : > { %v2817_v33 = vadd.f32 %v1120_v43, %v1099_v6  ;;  %v2819_v21 = vadd.f32 %v1120_v43, %v1100_v8 }
 0x1ef   : > { %v1139_v47 = vmax.f32 %v2817_v33, 0.0  ;;  %v1140_v4 = vmax.f32 %v2819_v21, 0.0 }
 0x1f1   : > { %v851_v51 = vpop.permute.xlu0 %850  ;;  %v1149_v52 = vadd.f32 %v1140_v4, %v1139_v47 }
 0x1f2   : > { %v857_v42 = vsel %vm552_vm0, %v851_v51, %v853_v28  ;;  %v869_v27 = vsel %vm552_vm0, 0.0, %v851_v51 }
 0x1f3   : > { %1150 = vadd.xlane.f32.xlu0 %v1149_v52  ;;  %v1077_v14 = vpop.permute.xlu1 %1076  ;;  %v965_v19 = vadd.f32 %v2761_v23, %v857_v42  ;;  %v964_v10 = vadd.f32 %v2758_v46, %v869_v27  ;;  %v2093_v46 = vpop.eup %2092  ;;  %v1188_v52 = vld [vmem:[%s3281_s7] sm:$0x1]  ;;  %v1192_v27 = vld [vmem:[%s3282_s8 + $0x8] sm:$0xff] }
 0x1f4   : > { %v1094_v36 = vsel %vm1078_vm3, %v1077_v14, 0.0  ;;  %v1156_v61 = vmul.f32 256.0, %v2093_v46  ;;  %vm1160_vm4 = vweird.f32 %v2093_v46 }
 0x1f5   : > { %v1102_v49 = vadd.f32 %v1094_v36, %v965_v19  ;;  %v1191_v19 = vld [vmem:[%s3282_s8] sm:$0xff] }
 0x1f6   : > { %v1157_v58 = vsub.f32 1.0, %v1156_v61 }
 0x1f8   : > { %v1158_v9 = vmul.f32 %v2093_v46, %v1157_v58 }
 0x1f9   : > { %v1075_v48 = vpop.permute.xlu0 %1074 }
 0x1fa   : > { %v1082_v40 = vsel %vm1078_vm3, %v1075_v48, %v1077_v14  ;;  %v1159_v7 = vadd.f32 %v2093_v46, %v1158_v9  ;;  %v1213_v9 = vld [vmem:[%s3283_s9 + $0x8] sm:$0xff] }
 0x1fb   : > { %v1101_v31 = vadd.f32 %v1082_v40, %v964_v10 }
 0x1fc   : > { %v2843_v11 = vsel %vm1160_vm4, %v2093_v46, %v1159_v7  ;;  %v1212_v7 = vld [vmem:[%s3283_s9] sm:$0xff] }
 0x201   : > { %v1125_v60 = vpop.permute.xlu0 %1124 }
 0x202   : > { %v2833_v37 = vadd.f32 %v1125_v60, %v1101_v31  ;;  %v2835_v12 = vadd.f32 %v1125_v60, %v1102_v49  ;;  %v1194_v60 = vld [vmem:[%s3282_s8 + $0x18] sm:$0xff] }
 0x204   : > { %v1141_v30 = vmax.f32 %v2833_v37, 0.0  ;;  %v1142_v20 = vmax.f32 %v2835_v12, 0.0  ;;  %v1341_v37 = vld [vmem:[%s3284_s10 + $0x8] sm:$0xff] }
 0x206   : > { %v1152_v23 = vadd.f32 %v1142_v20, %v1141_v30 }
 0x208   : > { %1153 = vadd.xlane.f32.xlu2 %v1152_v23  ;;  %v1193_v23 = vld [vmem:[%s3282_s8 + $0x10] sm:$0xff] }
 0x240   : > { %v1145_v39 = vpop.xlane.xlu1 %1144 }
 0x241   : > { %v1162_v38 = vmul.f32 %v2843_v11, %v1145_v39 }
 0x243   : > { %v1170_v5 = vmul.f32 %v1166_v63, %v1162_v38  ;;  %v1214_v63 = vld [vmem:[%s3283_s9 + $0x10] sm:$0xff] }
 0x245   : > { %v1175_v17 = vsel %vm1174_vm5, %v1170_v5, 0.0 }
 0x257   : > { %v1148_v59 = vpop.xlane.xlu2 %1147 }
 0x258   : > { %v1163_v53 = vmul.f32 %v2843_v11, %v1148_v59 }
 0x25a   : > { %v1171_v22 = vmul.f32 %v1167_v15, %v1163_v53 }
 0x25c   : > { %v1176_v16 = vsel %vm1174_vm5, %v1171_v22, 0.0 }
 0x25d   : > { %v1177_v24 = vadd.f32 %v1176_v16, %v1175_v17 }
 0x266   : > { %v1151_v32 = vpop.xlane.xlu0 %1150 }
 0x267   : > { %v1164_v62 = vmul.f32 %v2843_v11, %v1151_v32 }
 0x269   : > { %v1172_v13 = vmul.f32 %v1168_v18, %v1164_v62  ;;  %v1215_v62 = vld [vmem:[%s3283_s9 + $0x18] sm:$0xff] }
 0x26b   : > { %v1178_v0 = vsel %vm1174_vm5, %v1172_v13, 0.0 }
 0x26c   : > { %v1179_v45 = vadd.f32 %v1178_v0, %v1177_v24 }
 0x27b   : > { %v1154_v29 = vpop.xlane.xlu2 %1153 }
 0x27c   : > { %v1165_v2 = vmul.f32 %v2843_v11, %v1154_v29 }
 0x27e   : > { %v1173_v34 = vmul.f32 %v1169_v54, %v1165_v2 }
 0x280   : > { %v1180_v57 = vsel %vm1174_vm5, %v1173_v34, 0.0 }
 0x281   : > { %v1181_v35 = vadd.f32 %v1180_v57, %v1179_v45 }
 0x283   : > { %v1182_v6 = vrot.slane %v1181_v35, 4 }
 0x285   : > { %v1183_v8 = vadd.f32 %v1182_v6, %v1181_v35 }
 0x287   : > { %v1184_v43 = vrot.slane %v1183_v8, 2 }
 0x289   : > { %v1185_v28 = vadd.f32 %v1184_v43, %v1183_v8 }
 0x28b   : > { %v1186_v51 = vrot.slane %v1185_v28, 1 }
 0x28d   : > { %v1187_v42 = vadd.f32 %v1186_v51, %v1185_v28 }
 0x28f   : > { %v1189_v48 = vadd.f32 %v1188_v52, %v1187_v42 }
 0x291   : > { %v1190_v14 = vmax.f32 %v1189_v48, 0.0 }
 0x293   : > { %v1195_v36 = vperm.slane %v1190_v14, 0 }
 0x295   : > { %v1197_v40 = vmul.f32 %v1195_v36, %v1192_v27  ;;  %v1196_v10 = vmul.f32 %v1195_v36, %v1191_v19  ;;  %v1199_v56 = vmul.f32 %v1195_v36, %v1194_v60  ;;  %v1198_v46 = vmul.f32 %v1195_v36, %v1193_v23 }
 0x297   : > { %v1203_v49 = vsel %vm1174_vm5, %v1197_v40, 0.0  ;;  %v1200_v31 = vsel %vm1174_vm5, %v1196_v10, 0.0  ;;  %v1209_v61 = vsel %vm1174_vm5, %v1199_v56, 0.0  ;;  %v1206_v58 = vsel %vm1174_vm5, %v1198_v46, 0.0 }
 0x298   : > { %1204 = vadd.xlane.f32.xlu2 %v1203_v49  ;;  %1201 = vadd.xlane.f32.xlu1 %v1200_v31 }
 0x2a0   : > { %1210 = vadd.xlane.f32.xlu2 %v1209_v61  ;;  %1207 = vadd.xlane.f32.xlu1 %v1206_v58 }
 0x30b   : > { %v1205_v59 = vpop.xlane.xlu2 %1204  ;;  %v1202_v39 = vpop.xlane.xlu1 %1201 }
 0x30c   : > { %v1217_v32 = vadd.f32 %v1213_v9, %v1205_v59  ;;  %v1216_v53 = vadd.f32 %v1212_v7, %v1202_v39 }
 0x30e   : > { %v1973_v15 = vmul.f32 -1.442695, %v1217_v32  ;;  %v1972_v38 = vmul.f32 -1.442695, %v1216_v53 }
 0x310   : > { %2094 = vpow2.f32 %v1973_v15 }
 0x311   : > { %2096 = vpow2.f32 %v1972_v38 }
 0x313   : > { %v1211_v18 = vpop.xlane.xlu2 %1210  ;;  %v1208_v22 = vpop.xlane.xlu1 %1207 }
 0x314   : > { %v1219_v5 = vadd.f32 %v1215_v62, %v1211_v18  ;;  %v1218_v13 = vadd.f32 %v1214_v63, %v1208_v22  ;;  %v1476_v62 = vld [vmem:[%s3286_s12 + $0x8] sm:$0xff] }
 0x316   : > { %v2095_v16 = vpop.eup %2094  ;;  %v1975_v54 = vmul.f32 -1.442695, %v1219_v5  ;;  %v1974_v0 = vmul.f32 -1.442695, %v1218_v13 }
 0x317   : > { %v2097_v29 = vpop.eup %2096  ;;  %v1233_v17 = vadd.f32 1.0, %v2095_v16 }
 0x318   : > { %v1232_v2 = vadd.f32 1.0, %v2097_v29  ;;  %2098 = vpow2.f32 %v1975_v54 }
 0x319   : > { %2100 = vrcp.f32 %v1233_v17  ;;  %v1260_v51 = vand.u32 2147483647, %v1233_v17  ;;  %v1262_v52 = vand.u32 2147483648, %v1233_v17  ;;  %vm1256_vm8 = vweird.f32 %v1233_v17 }
 0x31a   : > { %2102 = vrcp.f32 %v1232_v2  ;;  %v1247_v14 = vand.u32 2147483648, %v1232_v2  ;;  %v1245_v19 = vand.u32 2147483647, %v1232_v2  ;;  %vm1241_vm10 = vweird.f32 %v1232_v2 }
 0x31b   : > { %2104 = vpow2.f32 %v1974_v0  ;;  %v1263_v10 = vor.u32 1.1754944e-38, %v1262_v52  ;;  %vm1261_vm11 = vcmp.eq.f32.partialorder %v1260_v51, 8.507059e+37  ;;  %v1475_v0 = vld [vmem:[%s3286_s12] sm:$0xff] }
 0x31c   : > { %v1248_v60 = vor.u32 1.1754944e-38, %v1247_v14  ;;  %vm1246_vm13 = vcmp.eq.f32.partialorder %v1245_v19, 8.507059e+37 }
 0x31e   : > { %v2099_v24 = vpop.eup %2098 }
 0x31f   : > { %v2101_v34 = vpop.eup %2100  ;;  %v1235_v45 = vadd.f32 1.0, %v2099_v24 }
 0x320   : > { %v2103_v57 = vpop.eup %2102  ;;  %v1252_v35 = vmul.f32 %v2101_v34, %v1233_v17  ;;  %vm1257_vm6 = vweird.f32 %v2101_v34 }
 0x321   : > { %v2105_v6 = vpop.eup %2104  ;;  %2106 = vrcp.f32 %v1235_v45  ;;  %v1237_v8 = vmul.f32 %v2103_v57, %v1232_v2  ;;  %vm1242_vm7 = vweird.f32 %v2103_v57  ;;  %vm1258_vm9 = vmor %vm1256_vm8, %vm1257_vm6  ;;  %v1292_v7 = vand.u32 2147483648, %v1235_v45 }
 0x322   : > { %v1234_v43 = vadd.f32 1.0, %v2105_v6  ;;  %v1253_v28 = vsub.f32 1.0, %v1252_v35  ;;  %vm1243_vm12 = vmor %vm1241_vm10, %vm1242_vm7  ;;  %v1290_v32 = vand.u32 2147483647, %v1235_v45  ;;  %vm1286_vm15 = vweird.f32 %v1235_v45 }
 0x323   : > { %v1238_v42 = vsub.f32 1.0, %v1237_v8  ;;  %v1293_v63 = vor.u32 1.1754944e-38, %v1292_v7  ;;  %v3317_v2 = vmov 1   ;;  %vm1348_vm6 = vcmask 15360  }
 0x324   : > { %2108 = vrcp.f32 %v1234_v43  ;;  %v1254_v48 = vmul.f32 %v2101_v34, %v1253_v28  ;;  %v1277_v38 = vand.u32 2147483648, %v1234_v43  ;;  %v1275_v22 = vand.u32 2147483647, %v1234_v43  ;;  %v1340_v28 = vld [vmem:[%s3284_s10] sm:$0xff] }
 0x325   : > { %v1239_v27 = vmul.f32 %v2103_v57, %v1238_v42  ;;  %vm1291_vm2 = vcmp.eq.f32.partialorder %v1290_v32, 8.507059e+37  ;;  %vm1271_vm3 = vweird.f32 %v1234_v43 }
 0x326   : > { %v1255_v36 = vadd.f32 %v2101_v34, %v1254_v48  ;;  %v1278_v54 = vor.u32 1.1754944e-38, %v1277_v38  ;;  %vm1276_vm5 = vcmp.eq.f32.partialorder %v1275_v22, 8.507059e+37  ;;  %v1363_v38 = vld [vmem:[%s3285_s11] sm:$0xff] }
 0x327   : > { %v2107_v40 = vpop.eup %2106  ;;  %v1240_v49 = vadd.f32 %v2103_v57, %v1239_v27  ;;  %v1342_v27 = vld [vmem:[%s3284_s10 + $0x10] sm:$0xff] }
 0x328   : > { %v1259_v31 = vsel %vm1258_vm9, %v2101_v34, %v1255_v36  ;;  %v1282_v23 = vmul.f32 %v2107_v40, %v1235_v45  ;;  %vm1287_vm14 = vweird.f32 %v2107_v40 }
 0x329   : > { %v1264_v56 = vsel %vm1261_vm11, %v1263_v10, %v1259_v31  ;;  %v1244_v46 = vsel %vm1243_vm12, %v2103_v57, %v1240_v49  ;;  %vm1288_vm0 = vmor %vm1286_vm15, %vm1287_vm14  ;;  %v1343_v49 = vld [vmem:[%s3284_s10 + $0x18] sm:$0xff] }
 0x32a   : > { %v2109_v61 = vpop.eup %2108  ;;  %1303 = vperm.xlu1 %2083, %v1264_v56   ;;  %v1249_v58 = vsel %vm1246_vm13, %v1248_v60, %v1244_v46  ;;  %v1283_v9 = vsub.f32 1.0, %v1282_v23 }
 0x32b   : > { %1298 = vperm.xlu0 %2081, %v1249_v58   ;;  %v1267_v59 = vmul.f32 %v2109_v61, %v1234_v43  ;;  %vm1272_vm1 = vweird.f32 %v2109_v61 }
 0x32c   : > { %v1284_v39 = vmul.f32 %v2107_v40, %v1283_v9  ;;  %vm1273_vm4 = vmor %vm1271_vm3, %vm1272_vm1 }
 0x32d   : > { %v1268_v53 = vsub.f32 1.0, %v1267_v59 }
 0x32e   : > { %v1285_v15 = vadd.f32 %v2107_v40, %v1284_v39 }
 0x32f   : > { %v1269_v18 = vmul.f32 %v2109_v61, %v1268_v53 }
 0x330   : > { %v1289_v5 = vsel %vm1288_vm0, %v2107_v40, %v1285_v15  ;;  %v1365_v15 = vld [vmem:[%s3285_s11 + $0x10] sm:$0xff] }
 0x331   : > { %v1294_v13 = vsel %vm1291_vm2, %v1293_v63, %v1289_v5  ;;  %v1270_v16 = vadd.f32 %v2109_v61, %v1269_v18 }
 0x332   : > { %1490 = vperm.xlu1 %2083, %v1476_v62  }
 0x333   : > { %1313 = vperm.xlu0 %2081, %v1294_v13   ;;  %v1274_v29 = vsel %vm1273_vm4, %v2109_v61, %v1270_v16 }
 0x334   : > { %v1279_v17 = vsel %vm1276_vm5, %v1278_v54, %v1274_v29  ;;  %v1366_v54 = vld [vmem:[%s3285_s11 + $0x18] sm:$0xff] }
 0x335   : > { %1308 = vperm.xlu2 %2084, %v1279_v17  }
 0x33b   : > { %2085 = vset.pattern.permute.xlu0 %v3317_v2 }
 0x33d   : > { %1485 = vperm.xlu2 %2084, %v1475_v0  }
 0x345   : > { %2086 = vset.pattern.permute.xlu2 %v3317_v2 }
 0x346   : > { %1564 = vperm.xlu2 %2086, %v1476_v62  }
 0x38f   : > { %v1309_v24 = vpop.permute.xlu2 %1308 }
 0x390   : > { %v2906_v34 = vmul.f32 %v1309_v24, %v1139_v47  ;;  %v2910_v45 = vmul.f32 %v1309_v24, %v1140_v4  ;;  %v1482_v24 = vld [vmem:[%s3287_s13 + $0x18] sm:$0xff] }
 0x392   : > { %v1330_v57 = vadd.f32 %v2910_v45, %v2906_v34 }
 0x394   : > { %1331 = vadd.xlane.f32.xlu2 %v1330_v57  ;;  %v1481_v57 = vld [vmem:[%s3287_s13 + $0x10] sm:$0xff] }
 0x39c   : > { %v1304_v35 = vpop.permute.xlu1 %1303 }
 0x39d   : > { %v1299_v6 = vpop.permute.xlu0 %1298  ;;  %v2916_v8 = vmul.f32 %v1304_v35, %v1137_v50  ;;  %v2920_v43 = vmul.f32 %v1304_v35, %v1138_v1  ;;  %v3318_v35 = vmov 0  }
 0x39e   : > { %v2924_v33 = vmul.f32 %v1299_v6, %v1135_v3  ;;  %v2928_v21 = vmul.f32 %v1299_v6, %v1136_v55  ;;  %v1477_v3 = vld [vmem:[%s3286_s12 + $0x10] sm:$0xff]  ;;  %v2947_v55 = vpop.permute.xlu2 %1485  ;;  %v1480_v6 = vld [vmem:[%s3287_s13 + $0x8] sm:$0xff] }
 0x39f   : > { %v1327_v47 = vadd.f32 %v2920_v43, %v2916_v8 }
 0x3a0   : > { %v1324_v41 = vadd.f32 %v2928_v21, %v2924_v33 }
 0x3a1   : > { %1328 = vadd.xlane.f32.xlu0 %v1327_v47  ;;  %v1806_v47 = vld [vmem:[%s3289_s15 + $0x8] sm:$0xff] }
 0x3a2   : > { %1325 = vadd.xlane.f32.xlu1 %v1324_v41  ;;  %v1479_v41 = vld [vmem:[%s3287_s13] sm:$0xff] }
 0x3a4   : > { %v2949_v1 = vpop.permute.xlu1 %1490 }
 0x3a5   : > { %v1314_v50 = vpop.permute.xlu0 %1313 }
 0x3a6   : > { %v2936_v44 = vmul.f32 %v1314_v50, %v1141_v30  ;;  %v2940_v26 = vmul.f32 %v1314_v50, %v1142_v20  ;;  %v2951_v4 = vpop.permute.xlu2 %1564  ;;  %v1805_v50 = vld [vmem:[%s3289_s15] sm:$0xff] }
 0x3a8   : > { %v1333_v25 = vadd.f32 %v2940_v26, %v2936_v44 }
 0x3aa   : > { %1334 = vadd.xlane.f32.xlu1 %v1333_v25 }
 0x3ac   : > { %1568 = vperm.xlu2 %2086, %v1477_v3  }
 0x3b5   : > { %1560 = vperm.xlu0 %2085, %v1475_v0   ;;  %v1478_v0 = vld [vmem:[%s3286_s12 + $0x18] sm:$0xff] }
 0x3c3   : > { %1495 = vperm.xlu1 %2083, %v1477_v3  }
 0x407   : > { %v1332_v30 = vpop.xlane.xlu2 %1331 }
 0x408   : > { %v1338_v48 = vmul.f32 %v1332_v30, %v2843_v11 }
 0x40a   : > { %v1346_v40 = vmul.f32 %v1342_v27, %v1338_v48 }
 0x40c   : > { %v1352_v23 = vsel %vm1348_vm6, %v1346_v40, 0.0 }
 0x414   : > { %v1329_v12 = vpop.xlane.xlu0 %1328 }
 0x415   : > { %v1337_v20 = vmul.f32 %v1329_v12, %v2843_v11  ;;  %v1326_v51 = vpop.xlane.xlu1 %1325 }
 0x416   : > { %v1336_v52 = vmul.f32 %v1326_v51, %v2843_v11 }
 0x417   : > { %v1345_v42 = vmul.f32 %v1341_v37, %v1337_v20 }
 0x418   : > { %v1344_v14 = vmul.f32 %v1340_v28, %v1336_v52 }
 0x419   : > { %v1350_v19 = vsel %vm1348_vm6, %v1345_v42, 0.0 }
 0x41a   : > { %v1349_v36 = vsel %vm1348_vm6, %v1344_v14, 0.0 }
 0x41b   : > { %v1351_v10 = vadd.f32 %v1350_v19, %v1349_v36 }
 0x41d   : > { %v1335_v31 = vpop.xlane.xlu1 %1334  ;;  %v1353_v46 = vadd.f32 %v1352_v23, %v1351_v10 }
 0x41e   : > { %v1339_v60 = vmul.f32 %v1335_v31, %v2843_v11  ;;  %v1364_v11 = vld [vmem:[%s3285_s11 + $0x8] sm:$0xff] }
 0x420   : > { %v1347_v56 = vmul.f32 %v1343_v49, %v1339_v60 }
 0x422   : > { %v1354_v61 = vsel %vm1348_vm6, %v1347_v56, 0.0 }
 0x423   : > { %v1355_v58 = vadd.f32 %v1354_v61, %v1353_v46 }
 0x425   : > { %v1356_v9 = vrot.slane %v1355_v58, 4 }
 0x427   : > { %v1357_v7 = vadd.f32 %v1356_v9, %v1355_v58  ;;  %v3019_v3 = vpop.permute.xlu0 %1560 }
 0x429   : > { %v1358_v59 = vrot.slane %v1357_v7, 2 }
 0x42b   : > { %v1359_v39 = vadd.f32 %v1358_v59, %v1357_v7 }
 0x42d   : > { %v1360_v32 = vrot.slane %v1359_v39, 1 }
 0x42f   : > { %v1361_v53 = vadd.f32 %v1360_v32, %v1359_v39 }
 0x431   : > { %v1362_v62 = vmax.f32 %v1361_v53, 0.0 }
 0x433   : > { %v1369_v63 = vmul.f32 %v1365_v15, %v1362_v62  ;;  %v1368_v18 = vmul.f32 %v1364_v11, %v1362_v62  ;;  %v1367_v22 = vmul.f32 %v1363_v38, %v1362_v62  ;;  %v1370_v29 = vmul.f32 %v1366_v54, %v1362_v62 }
 0x435   : > { %v1377_v5 = vsel %vm1348_vm6, %v1369_v63, 0.0  ;;  %v1374_v13 = vsel %vm1348_vm6, %v1368_v18, 0.0  ;;  %v1371_v16 = vsel %vm1348_vm6, %v1367_v22, 0.0  ;;  %v1380_v17 = vsel %vm1348_vm6, %v1370_v29, 0.0  ;;  %v3017_v25 = vpop.permute.xlu1 %1495 }
 0x436   : > { %1378 = vadd.xlane.f32.xlu1 %v1377_v5  ;;  %1375 = vadd.xlane.f32.xlu2 %v1374_v13 }
 0x437   : > { %1372 = vadd.xlane.f32.xlu0 %v1371_v16 }
 0x43f   : > { %1381 = vadd.xlane.f32.xlu0 %v1380_v17 }
 0x44e   : > { %1572 = vperm.xlu2 %2086, %v1478_v0  }
 0x44f   : > { %1500 = vperm.xlu1 %2083, %v1478_v0  }
 0x453   : > { %1616 = vperm.xlu0 %2085, %v1482_v24  }
 0x456   : > { %2087 = vset.pattern.permute.xlu2 %v3318_v35 }
 0x457   : > { %1548 = vperm.xlu1 %2083, %v1482_v24   ;;  %1543 = vperm.xlu2 %2087, %v1481_v57  }
 0x45b   : > { %2089 = vset.pattern.permute.xlu0 %v3318_v35 }
 0x45c   : > { %1538 = vperm.xlu0 %2089, %v1480_v6  }
 0x45f   : > { %2088 = vset.pattern.permute.xlu1 %v3317_v2  ;;  %2090 = vset.pattern.permute.xlu2 %v3317_v2  ;;  %v3015_v2 = vpop.permute.xlu2 %1568 }
 0x460   : > { %1612 = vperm.xlu1 %2088, %v1481_v57   ;;  %1608 = vperm.xlu2 %2090, %v1480_v6  }
 0x464   : > { %1814 = vperm.xlu0 %2089, %v1806_v47  }
 0x468   : > { %2091 = vset.pattern.permute.xlu1 %v3318_v35  ;;  %1604 = vperm.xlu2 %2090, %v1479_v41  }
 0x469   : > { %1533 = vperm.xlu1 %2091, %v1479_v41  }
 0x471   : > { %1809 = vperm.xlu1 %2091, %v1805_v50  }
 0x4a9   : > { %v1376_v37 = vpop.xlane.xlu2 %1375  ;;  %v1379_v12 = vpop.xlane.xlu1 %1378 }
 0x4aa   : > { %v1977_v30 = vmul.f32 -1.442695, %v1376_v37  ;;  %v1373_v20 = vpop.xlane.xlu0 %1372  ;;  %v1978_v28 = vmul.f32 -1.442695, %v1379_v12 }
 0x4ab   : > { %v1976_v51 = vmul.f32 -1.442695, %v1373_v20 }
 0x4ac   : > { %2110 = vpow2.f32 %v1977_v30 }
 0x4ad   : > { %2112 = vpow2.f32 %v1976_v51 }
 0x4ae   : > { %2114 = vpow2.f32 %v1978_v28 }
 0x4b2   : > { %v2111_v52 = vpop.eup %2110  ;;  %v1382_v42 = vpop.xlane.xlu0 %1381 }
 0x4b3   : > { %v2113_v48 = vpop.eup %2112  ;;  %v1396_v14 = vadd.f32 1.0, %v2111_v52  ;;  %v1979_v27 = vmul.f32 -1.442695, %v1382_v42 }
 0x4b4   : > { %v2115_v19 = vpop.eup %2114  ;;  %v1395_v36 = vadd.f32 1.0, %v2113_v48 }
 0x4b5   : > { %2116 = vrcp.f32 %v1396_v14  ;;  %v1397_v40 = vadd.f32 1.0, %v2115_v19  ;;  %v1423_v46 = vand.u32 2147483647, %v1396_v14  ;;  %v1425_v9 = vand.u32 2147483648, %v1396_v14 }
 0x4b6   : > { %2118 = vrcp.f32 %v1395_v36  ;;  %v1408_v59 = vand.u32 2147483647, %v1395_v36  ;;  %v1410_v39 = vand.u32 2147483648, %v1395_v36  ;;  %vm1419_vm8 = vweird.f32 %v1396_v14 }
 0x4b7   : > { %2120 = vpow2.f32 %v1979_v27  ;;  %v1438_v11 = vand.u32 2147483647, %v1397_v40  ;;  %vm1424_vm10 = vcmp.eq.f32.partialorder %v1423_v46, 8.507059e+37  ;;  %vm1404_vm11 = vweird.f32 %v1395_v36 }
 0x4b8   : > { %2122 = vrcp.f32 %v1397_v40  ;;  %v1426_v63 = vor.u32 1.1754944e-38, %v1425_v9  ;;  %vm1409_vm13 = vcmp.eq.f32.partialorder %v1408_v59, 8.507059e+37  ;;  %v1440_v22 = vand.u32 2147483648, %v1397_v40 }
 0x4b9   : > { %v1411_v13 = vor.u32 1.1754944e-38, %v1410_v39  ;;  %vm1434_vm0 = vweird.f32 %v1397_v40  ;;  %vm1439_vm1 = vcmp.eq.f32.partialorder %v1438_v11, 8.507059e+37 }
 0x4ba   : > { %v1441_v41 = vor.u32 1.1754944e-38, %v1440_v22 }
 0x4bb   : > { %v2117_v10 = vpop.eup %2116 }
 0x4bc   : > { %v2119_v49 = vpop.eup %2118  ;;  %v1415_v31 = vmul.f32 %v2117_v10, %v1396_v14  ;;  %vm1420_vm7 = vweird.f32 %v2117_v10 }
 0x4bd   : > { %v2121_v60 = vpop.eup %2120  ;;  %v1400_v23 = vmul.f32 %v2119_v49, %v1395_v36  ;;  %vm1405_vm9 = vweird.f32 %v2119_v49  ;;  %vm1421_vm12 = vmor %vm1419_vm8, %vm1420_vm7 }
 0x4be   : > { %v1416_v56 = vsub.f32 1.0, %v1415_v31  ;;  %v3021_v61 = vadd.f32 1.0, %v2121_v60  ;;  %v2123_v58 = vpop.eup %2122  ;;  %vm1406_vm14 = vmor %vm1404_vm11, %vm1405_vm9 }
 0x4bf   : > { %v1401_v7 = vsub.f32 1.0, %v1400_v23  ;;  %v1430_v53 = vmul.f32 %v2123_v58, %v1397_v40  ;;  %vm1435_vm15 = vweird.f32 %v2123_v58 }
 0x4c0   : > { %v1417_v32 = vmul.f32 %v2117_v10, %v1416_v56  ;;  %2124 = vrcp.f32 %v3021_v61  ;;  %vm1436_vm2 = vmor %vm1434_vm0, %vm1435_vm15  ;;  %v1453_v12 = vand.u32 2147483647, %v3021_v61  ;;  %v1455_v48 = vand.u32 2147483648, %v3021_v61 }
 0x4c1   : > { %v1402_v15 = vmul.f32 %v2119_v49, %v1401_v7  ;;  %v1431_v62 = vsub.f32 1.0, %v1430_v53  ;;  %vm1449_vm4 = vweird.f32 %v3021_v61  ;;  %v1501_v46 = vpop.permute.xlu1 %1500 }
 0x4c2   : > { %v1418_v38 = vadd.f32 %v2117_v10, %v1417_v32  ;;  %vm1454_vm6 = vcmp.eq.f32.partialorder %v1453_v12, 8.507059e+37 }
 0x4c3   : > { %v1403_v18 = vadd.f32 %v2119_v49, %v1402_v15  ;;  %v1432_v16 = vmul.f32 %v2123_v58, %v1431_v62 }
 0x4c4   : > { %v1422_v5 = vsel %vm1421_vm12, %v2117_v10, %v1418_v38 }
 0x4c5   : > { %v1427_v54 = vsel %vm1424_vm10, %v1426_v63, %v1422_v5  ;;  %v1407_v29 = vsel %vm1406_vm14, %v2119_v49, %v1403_v18  ;;  %v1433_v35 = vadd.f32 %v2123_v58, %v1432_v16  ;;  %v1573_v49 = vpop.permute.xlu2 %1572 }
 0x4c6   : > { %v2125_v17 = vpop.eup %2124  ;;  %v1461_v0 = vmul.f32 %v1427_v54, %v2916_v8  ;;  %v1462_v24 = vmul.f32 %v1427_v54, %v2920_v43  ;;  %v1412_v57 = vsel %vm1409_vm13, %v1411_v13, %v1407_v29 }
 0x4c7   : > { %v1459_v6 = vmul.f32 %v1412_v57, %v2924_v33  ;;  %v1460_v47 = vmul.f32 %v1412_v57, %v2928_v21  ;;  %v1445_v50 = vmul.f32 %v2125_v17, %v3021_v61  ;;  %v1437_v37 = vsel %vm1436_vm2, %v2123_v58, %v1433_v35 }
 0x4c8   : > { %v3031_v30 = vmul.f32 %v1461_v0, %v2916_v8  ;;  %v3034_v20 = vmul.f32 %v1462_v24, %v2920_v43  ;;  %v1442_v28 = vsel %vm1439_vm1, %v1441_v41, %v1437_v37  ;;  %vm1450_vm3 = vweird.f32 %v2125_v17 }
 0x4c9   : > { %v1446_v51 = vsub.f32 1.0, %v1445_v50  ;;  %v3037_v52 = vmul.f32 %v1459_v6, %v2924_v33  ;;  %v3040_v42 = vmul.f32 %v1460_v47, %v2928_v21  ;;  %v1463_v14 = vmul.f32 %v1442_v28, %v2906_v34  ;;  %vm1451_vm5 = vmor %vm1449_vm4, %vm1450_vm3  ;;  %v1549_v24 = vpop.permute.xlu1 %1548 }
 0x4ca   : > { %v1464_v27 = vmul.f32 %v1442_v28, %v2910_v45  ;;  %v1505_v19 = vmul.f32 %v2949_v1, %v3031_v30  ;;  %v1506_v33 = vmul.f32 %v2949_v1, %v3034_v20  ;;  %v1577_v10 = vmul.f32 %v2951_v4, %v3031_v30 }
 0x4cb   : > { %v1447_v8 = vmul.f32 %v2125_v17, %v1446_v51  ;;  %v1503_v43 = vmul.f32 %v2947_v55, %v3037_v52  ;;  %v1504_v21 = vmul.f32 %v2947_v55, %v3040_v42  ;;  %v1575_v36 = vmul.f32 %v3019_v3, %v3037_v52 }
 0x4cc   : > { %v1576_v40 = vmul.f32 %v3019_v3, %v3040_v42  ;;  %v1578_v60 = vmul.f32 %v2951_v4, %v3034_v20  ;;  %v1456_v1 = vor.u32 1.1754944e-38, %v1455_v48  ;;  %v3064_v55 = vmul.f32 %v1463_v14, %v2906_v34 }
 0x4cd   : > { %v1448_v31 = vadd.f32 %v2125_v17, %v1447_v8  ;;  %v3067_v23 = vmul.f32 %v1464_v27, %v2910_v45  ;;  %v1511_v56 = vadd.f32 %v1505_v19, %v1503_v43  ;;  %v1520_v9 = vadd.f32 %v1506_v33, %v1504_v21  ;;  %v1544_v13 = vpop.permute.xlu2 %1543  ;;  %v1617_v19 = vpop.permute.xlu0 %1616 }
 0x4ce   : > { %v1583_v61 = vadd.f32 %v1577_v10, %v1575_v36  ;;  %v1592_v7 = vadd.f32 %v1578_v60, %v1576_v40  ;;  %v1507_v39 = vmul.f32 %v3017_v25, %v3064_v55  ;;  %v1579_v45 = vmul.f32 %v3015_v2, %v3064_v55 }
 0x4cf   : > { %v1452_v3 = vsel %vm1451_vm5, %v2125_v17, %v1448_v31  ;;  %v1508_v34 = vmul.f32 %v3017_v25, %v3067_v23  ;;  %v1580_v32 = vmul.f32 %v3015_v2, %v3067_v23 }
 0x4d0   : > { %v1457_v58 = vsel %vm1454_vm6, %v1456_v1, %v1452_v3  ;;  %v1512_v11 = vadd.f32 %v1511_v56, %v1507_v39  ;;  %v1584_v62 = vadd.f32 %v1583_v61, %v1579_v45 }
 0x4d1   : > { %v1465_v59 = vmul.f32 %v1457_v58, %v2936_v44  ;;  %v1466_v4 = vmul.f32 %v1457_v58, %v2940_v26  ;;  %v1521_v38 = vadd.f32 %v1520_v9, %v1508_v34  ;;  %v1593_v63 = vadd.f32 %v1592_v7, %v1580_v32 }
 0x4d2   : > { %v1613_v36 = vpop.permute.xlu1 %1612 }
 0x4d3   : > { %v3080_v53 = vmul.f32 %v1465_v59, %v2936_v44  ;;  %v3083_v15 = vmul.f32 %v1466_v4, %v2940_v26 }
 0x4d5   : > { %v1581_v18 = vmul.f32 %v1573_v49, %v3080_v53  ;;  %v1582_v25 = vmul.f32 %v1573_v49, %v3083_v15  ;;  %v1509_v22 = vmul.f32 %v1501_v46, %v3080_v53  ;;  %v1510_v5 = vmul.f32 %v1501_v46, %v3083_v15  ;;  %v1609_v27 = vpop.permute.xlu2 %1608 }
 0x4d7   : > { %v1513_v2 = vadd.f32 %v1512_v11, %v1509_v22  ;;  %v1522_v16 = vadd.f32 %v1521_v38, %v1510_v5  ;;  %v1585_v44 = vadd.f32 %v1584_v62, %v1581_v18  ;;  %v1594_v54 = vadd.f32 %v1593_v63, %v1582_v25  ;;  %v1539_v38 = vpop.permute.xlu0 %1538 }
 0x4d9   : > { %v1514_v29 = vrot.slane %v1513_v2, 4  ;;  %v1523_v26 = vrot.slane %v1522_v16, 4  ;;  %v1586_v17 = vrot.slane %v1585_v44, 4  ;;  %v1595_v0 = vrot.slane %v1594_v54, 4 }
 0x4db   : > { %v1515_v57 = vadd.f32 %v1514_v29, %v1513_v2  ;;  %v1524_v35 = vadd.f32 %v1523_v26, %v1522_v16  ;;  %v1587_v6 = vadd.f32 %v1586_v17, %v1585_v44  ;;  %v1596_v47 = vadd.f32 %v1595_v0, %v1594_v54  ;;  %v1534_v54 = vpop.permute.xlu1 %1533 }
 0x4dd   : > { %v1516_v41 = vrot.slane %v1515_v57, 2  ;;  %v1525_v50 = vrot.slane %v1524_v35, 2  ;;  %v1588_v37 = vrot.slane %v1587_v6, 2  ;;  %v1597_v12 = vrot.slane %v1596_v47, 2  ;;  %v1605_v62 = vpop.permute.xlu2 %1604 }
 0x4df   : > { %v1517_v28 = vadd.f32 %v1516_v41, %v1515_v57  ;;  %v1526_v51 = vadd.f32 %v1525_v50, %v1524_v35  ;;  %v1589_v48 = vadd.f32 %v1588_v37, %v1587_v6  ;;  %v1598_v14 = vadd.f32 %v1597_v12, %v1596_v47 }
 0x4e1   : > { %v1518_v8 = vrot.slane %v1517_v28, 1  ;;  %v1527_v43 = vrot.slane %v1526_v51, 1  ;;  %v1590_v33 = vrot.slane %v1589_v48, 1  ;;  %v1599_v21 = vrot.slane %v1598_v14, 1 }
 0x4e3   : > { %v1519_v40 = vadd.f32 %v1518_v8, %v1517_v28  ;;  %v1528_v10 = vadd.f32 %v1527_v43, %v1526_v51  ;;  %v1591_v49 = vadd.f32 %v1590_v33, %v1589_v48  ;;  %v1600_v31 = vadd.f32 %v1599_v21, %v1598_v14 }
 0x4e5   : > { %v1601_v60 = vmax.f32 %v1591_v49, 0.0  ;;  %v1602_v1 = vmax.f32 %v1600_v31, 0.0  ;;  %v1529_v3 = vmax.f32 %v1519_v40, 0.0  ;;  %v1530_v56 = vmax.f32 %v1528_v10, 0.0 }
 0x4e7   : > { %v1625_v46 = vmul.f32 %v1617_v19, %v1601_v60  ;;  %v1626_v58 = vmul.f32 %v1617_v19, %v1602_v1  ;;  %v1557_v9 = vmul.f32 %v1549_v24, %v1529_v3  ;;  %v1558_v61 = vmul.f32 %v1549_v24, %v1530_v56 }
 0x4e8   : > { %v1555_v7 = vmul.f32 %v1544_v13, %v1529_v3  ;;  %v1556_v59 = vmul.f32 %v1544_v13, %v1530_v56  ;;  %v1621_v4 = vmul.f32 %v1609_v27, %v1601_v60  ;;  %v1622_v39 = vmul.f32 %v1609_v27, %v1602_v1 }
 0x4e9   : > { %v1633_v34 = vadd.f32 %v1625_v46, %v1557_v9  ;;  %v1634_v45 = vadd.f32 %v1626_v58, %v1558_v61  ;;  %v1623_v32 = vmul.f32 %v1613_v36, %v1601_v60  ;;  %v1624_v11 = vmul.f32 %v1613_v36, %v1602_v1 }
 0x4ea   : > { %v1553_v63 = vmul.f32 %v1539_v38, %v1529_v3  ;;  %v1554_v18 = vmul.f32 %v1539_v38, %v1530_v56  ;;  %v1619_v25 = vmul.f32 %v1605_v62, %v1601_v60  ;;  %v1620_v22 = vmul.f32 %v1605_v62, %v1602_v1 }
 0x4eb   : > { %v1986_v5 = vmul.f32 -1.442695, %v1633_v34  ;;  %v1987_v2 = vmul.f32 -1.442695, %v1634_v45  ;;  %v1631_v16 = vadd.f32 %v1623_v32, %v1555_v7  ;;  %v1632_v44 = vadd.f32 %v1624_v11, %v1556_v59 }
 0x4ec   : > { %v1629_v29 = vadd.f32 %v1621_v4, %v1553_v63  ;;  %v1630_v26 = vadd.f32 %v1622_v39, %v1554_v18  ;;  %v1551_v13 = vmul.f32 %v1534_v54, %v1529_v3  ;;  %v1552_v17 = vmul.f32 %v1534_v54, %v1530_v56 }
 0x4ed   : > { %2126 = vpow2.f32 %v1986_v5  ;;  %v1984_v0 = vmul.f32 -1.442695, %v1631_v16  ;;  %v1985_v24 = vmul.f32 -1.442695, %v1632_v44 }
 0x4ee   : > { %2128 = vpow2.f32 %v1987_v2  ;;  %v1982_v57 = vmul.f32 -1.442695, %v1629_v29  ;;  %v1983_v35 = vmul.f32 -1.442695, %v1630_v26  ;;  %v1627_v6 = vadd.f32 %v1619_v25, %v1551_v13 }
 0x4ef   : > { %2130 = vpow2.f32 %v1984_v0  ;;  %v1628_v47 = vadd.f32 %v1620_v22, %v1552_v17 }
 0x4f0   : > { %2132 = vpow2.f32 %v1985_v24  ;;  %v1980_v41 = vmul.f32 -1.442695, %v1627_v6 }
 0x4f1   : > { %2134 = vpow2.f32 %v1982_v57  ;;  %v1981_v50 = vmul.f32 -1.442695, %v1628_v47 }
 0x4f2   : > { %2136 = vpow2.f32 %v1983_v35 }
 0x4f3   : > { %v2127_v37 = vpop.eup %2126  ;;  %2138 = vpow2.f32 %v1980_v41 }
 0x4f4   : > { %v2129_v12 = vpop.eup %2128  ;;  %v3089_v28 = vadd.f32 1.0, %v2127_v37  ;;  %2140 = vpow2.f32 %v1981_v50 }
 0x4f5   : > { %v2131_v51 = vpop.eup %2130  ;;  %v3091_v48 = vadd.f32 1.0, %v2129_v12 }
 0x4f6   : > { %v2133_v14 = vpop.eup %2132  ;;  %2142 = vrcp.f32 %v3089_v28  ;;  %v3094_v27 = vadd.f32 1.0, %v2131_v51  ;;  %v1768_v21 = vand.u32 2147483648, %v3089_v28  ;;  %v1766_v10 = vand.u32 2147483647, %v3089_v28 }
 0x4f7   : > { %v2135_v8 = vpop.eup %2134  ;;  %2144 = vrcp.f32 %v3091_v48  ;;  %v3097_v43 = vadd.f32 1.0, %v2133_v14  ;;  %v1783_v49 = vand.u32 2147483648, %v3091_v48  ;;  %v1781_v1 = vand.u32 2147483647, %v3091_v48 }
 0x4f8   : > { %v2137_v19 = vpop.eup %2136  ;;  %2146 = vrcp.f32 %v3094_v27  ;;  %v3100_v33 = vadd.f32 1.0, %v2135_v8  ;;  %vm1762_vm7 = vweird.f32 %v3089_v28  ;;  %v1736_v56 = vand.u32 2147483647, %v3094_v27 }
 0x4f9   : > { %v2139_v36 = vpop.eup %2138  ;;  %2148 = vrcp.f32 %v3097_v43  ;;  %v3104_v40 = vadd.f32 1.0, %v2137_v19  ;;  %v1769_v58 = vor.u32 1.1754944e-38, %v1768_v21  ;;  %vm1777_vm8 = vweird.f32 %v3091_v48 }
 0x4fa   : > { %v2141_v31 = vpop.eup %2140  ;;  %2150 = vrcp.f32 %v3100_v33  ;;  %v3109_v60 = vadd.f32 1.0, %v2139_v36  ;;  %v1738_v9 = vand.u32 2147483648, %v3094_v27  ;;  %v1751_v61 = vand.u32 2147483647, %v3097_v43 }
 0x4fb   : > { %2152 = vrcp.f32 %v3104_v40  ;;  %v3113_v3 = vadd.f32 1.0, %v2141_v31  ;;  %vm3123_vm9 = vcmp.eq.f32.partialorder %v1766_v10, 8.507059e+37  ;;  %v1784_v39 = vor.u32 1.1754944e-38, %v1783_v49 }
 0x4fc   : > { %v2143_v46 = vpop.eup %2142  ;;  %2154 = vrcp.f32 %v3109_v60  ;;  %vm1732_vm10 = vweird.f32 %v3094_v27  ;;  %vm3129_vm13 = vcmp.eq.f32.partialorder %v1781_v1, 8.507059e+37  ;;  %v1739_v11 = vor.u32 1.1754944e-38, %v1738_v9 }
 0x4fd   : > { %v2145_v7 = vpop.eup %2144  ;;  %2156 = vrcp.f32 %v3113_v3  ;;  %v1758_v59 = vmul.f32 %v2143_v46, %v3089_v28  ;;  %vm1763_vm11 = vweird.f32 %v2143_v46  ;;  %vm1747_vm14 = vweird.f32 %v3097_v43 }
 0x4fe   : > { %v2147_v34 = vpop.eup %2146  ;;  %v1773_v45 = vmul.f32 %v2145_v7, %v3091_v48  ;;  %vm1778_vm12 = vweird.f32 %v2145_v7  ;;  %vm3135_vm0 = vcmp.eq.f32.partialorder %v1736_v56, 8.507059e+37  ;;  %v1753_v25 = vand.u32 2147483648, %v3097_v43  ;;  %vm1764_vm5 = vmor %vm1762_vm7, %vm1763_vm11 }
 0x4ff   : > { %v2149_v38 = vpop.eup %2148  ;;  %v1759_v62 = vsub.f32 1.0, %v1758_v59  ;;  %v1728_v63 = vmul.f32 %v2147_v34, %v3094_v27  ;;  %vm1733_vm15 = vweird.f32 %v2147_v34  ;;  %vm3141_vm2 = vcmp.eq.f32.partialorder %v1751_v61, 8.507059e+37  ;;  %vm1779_vm3 = vmor %vm1777_vm8, %vm1778_vm12 }
 0x500   : > { %v2151_v22 = vpop.eup %2150  ;;  %v1774_v5 = vsub.f32 1.0, %v1773_v45  ;;  %v1743_v2 = vmul.f32 %v2149_v38, %v3097_v43  ;;  %vm1748_vm1 = vweird.f32 %v2149_v38  ;;  %v1754_v26 = vor.u32 1.1754944e-38, %v1753_v25  ;;  %vm1734_vm7 = vmor %vm1732_vm10, %vm1733_vm15 }
 0x501   : > { %v3146_v44 = vpop.eup %2152  ;;  %v1760_v54 = vmul.f32 %v2143_v46, %v1759_v62  ;;  %v1729_v29 = vsub.f32 1.0, %v1728_v63  ;;  %v1698_v13 = vmul.f32 %v2151_v22, %v3100_v33  ;;  %vm1703_vm4 = vweird.f32 %v2151_v22  ;;  %vm1749_vm8 = vmor %vm1747_vm14, %vm1748_vm1 }
 0x502   : > { %v3149_v17 = vpop.eup %2154  ;;  %v1775_v0 = vmul.f32 %v2145_v7, %v1774_v5  ;;  %v1744_v24 = vsub.f32 1.0, %v1743_v2  ;;  %v1706_v57 = vand.u32 2147483647, %v3100_v33  ;;  %v1708_v50 = vand.u32 2147483648, %v3100_v33 }
 0x503   : > { %v3152_v35 = vpop.eup %2156  ;;  %v1761_v6 = vadd.f32 %v2143_v46, %v1760_v54  ;;  %v1730_v47 = vmul.f32 %v2147_v34, %v1729_v29  ;;  %v1699_v41 = vsub.f32 1.0, %v1698_v13  ;;  %v1713_v14 = vmul.f32 %v3146_v44, %v3104_v40 }
 0x504   : > { %v1776_v37 = vadd.f32 %v2145_v7, %v1775_v0  ;;  %v1745_v12 = vmul.f32 %v2149_v38, %v1744_v24  ;;  %vm3158_vm6 = vcmp.eq.f32.partialorder %v1706_v57, 8.507059e+37  ;;  %v1709_v36 = vor.u32 1.1754944e-38, %v1708_v50 }
 0x505   : > { %v1765_v8 = vsel %vm1764_vm5, %v2143_v46, %v1761_v6  ;;  %v1731_v19 = vadd.f32 %v2147_v34, %v1730_v47  ;;  %v1700_v21 = vmul.f32 %v2151_v22, %v1699_v41  ;;  %v1714_v31 = vsub.f32 1.0, %v1713_v14  ;;  %v2158_v14 = vld [vmem:[%s2397_s29] sm:$0xff] }
 0x506   : > { %v1770_v28 = vsel %vm3123_vm9, %v1769_v58, %v1765_v8  ;;  %v1780_v10 = vsel %vm1779_vm3, %v2145_v7, %v1776_v37  ;;  %v1746_v49 = vadd.f32 %v2149_v38, %v1745_v12  ;;  %vm3329_vm9 = vweird.f32 %v3100_v33 }
 0x507   : > { %v1793_v1 = vmul.f32 %v1770_v28, %v3080_v53  ;;  %v1785_v56 = vsel %vm3129_vm13, %v1784_v39, %v1780_v10  ;;  %v1735_v48 = vsel %vm1734_vm7, %v2147_v34, %v1731_v19  ;;  %v1701_v46 = vadd.f32 %v2151_v22, %v1700_v21  ;;  %vm1704_vm10 = vmor %vm3329_vm9, %vm1703_vm4  ;;  %v2159_v21 = vld [vmem:[%s2397_s29 + $0x8] sm:$0xff]  ;;  %v1815_v28 = vpop.permute.xlu0 %1814 }
 0x508   : > { %v1794_v58 = vmul.f32 %v1785_v56, %v3083_v15  ;;  %v1740_v9 = vsel %vm3135_vm0, %v1739_v11, %v1735_v48  ;;  %v1750_v27 = vsel %vm1749_vm8, %v2149_v38, %v1746_v49  ;;  %v1715_v61 = vmul.f32 %v3146_v44, %v1714_v31  ;;  %v2160_v31 = vld [vmem:[%s2397_s29 + $0x10] sm:$0xff] }
 0x509   : > { %v1801_v7 = vmul.f32 %v1793_v1, %v3080_v53  ;;  %v1791_v59 = vmul.f32 %v1740_v9, %v3064_v55  ;;  %v1755_v43 = vsel %vm3141_vm2, %v1754_v26, %v1750_v27  ;;  %v1705_v4 = vsel %vm1704_vm10, %v2151_v22, %v1701_v46  ;;  %v2161_v46 = vld [vmem:[%s2397_s29 + $0x18] sm:$0xff] }
 0x50a   : > { %v1802_v39 = vmul.f32 %v1794_v58, %v3083_v15  ;;  %v1792_v34 = vmul.f32 %v1755_v43, %v3067_v23  ;;  %v1710_v45 = vsel %vm3158_vm6, %v1709_v36, %v1705_v4  ;;  %v1716_v33 = vadd.f32 %v3146_v44, %v1715_v61 }
 0x50b   : > { %1836 = vmatpush.msra.mxu2 %v1801_v7  ;;  %v1799_v32 = vmul.f32 %v1791_v59, %v3064_v55  ;;  %v1789_v53 = vmul.f32 %v1710_v45, %v3031_v30  ;;  %vm1717_vm11 = vweird.f32 %v3104_v40  ;;  %vm1718_vm12 = vweird.f32 %v3146_v44 }
 0x50c   : > { %1859 = vmatpush.msra.mxu3 %v1802_v39  ;;  %v1800_v11 = vmul.f32 %v1792_v34, %v3067_v23  ;;  %vm1719_vm13 = vmor %vm1717_vm11, %vm1718_vm12  ;;  %v1721_v15 = vand.u32 2147483647, %v3104_v40  ;;  %v1723_v38 = vand.u32 2147483648, %v3104_v40  ;;  %v1668_v62 = vmul.f32 %v3149_v17, %v3109_v60 }
 0x50d   : > { %1837 = vmatpush.msra.mxu2 %v1799_v32  ;;  %v1797_v55 = vmul.f32 %v1789_v53, %v3031_v30  ;;  %v1720_v63 = vsel %vm1719_vm13, %v3146_v44, %v1716_v33  ;;  %v1678_v23 = vand.u32 2147483648, %v3109_v60  ;;  %v1683_v22 = vmul.f32 %v3152_v35, %v3113_v3 }
 0x50e   : > { %1860 = vmatpush.msra.mxu3 %v1800_v11  ;;  %v1724_v18 = vor.u32 1.1754944e-38, %v1723_v38  ;;  %v1669_v25 = vsub.f32 1.0, %v1668_v62  ;;  %vm1722_vm14 = vcmp.eq.f32.partialorder %v1721_v15, 8.507059e+37  ;;  %vm1673_vm15 = vweird.f32 %v3149_v17 }
 0x50f   : > { %1838 = vmatpush.msra.mxu2 %v1797_v55  ;;  %v1676_v2 = vand.u32 2147483647, %v3109_v60  ;;  %v1684_v16 = vsub.f32 1.0, %v1683_v22  ;;  %vm1672_vm0 = vweird.f32 %v3109_v60  ;;  %vm1688_vm1 = vweird.f32 %v3152_v35 }
 0x510   : > { %v1725_v5 = vsel %vm1722_vm14, %v1724_v18, %v1720_v63  ;;  %v1670_v40 = vmul.f32 %v3149_v17, %v1669_v25  ;;  %v1693_v54 = vand.u32 2147483648, %v3113_v3  ;;  %vm1674_vm2 = vmor %vm1672_vm0, %vm1673_vm15  ;;  %v1679_v26 = vor.u32 1.1754944e-38, %v1678_v23 }
 0x511   : > { %v1790_v30 = vmul.f32 %v1725_v5, %v3034_v20  ;;  %v1685_v13 = vmul.f32 %v3152_v35, %v1684_v16  ;;  %v1691_v0 = vand.u32 2147483647, %v3113_v3  ;;  %vm1677_vm3 = vcmp.eq.f32.partialorder %v1676_v2, 8.507059e+37 }
 0x512   : > { %v1671_v44 = vadd.f32 %v3149_v17, %v1670_v40  ;;  %vm1687_vm4 = vweird.f32 %v3113_v3  ;;  %v1694_v47 = vor.u32 1.1754944e-38, %v1693_v54  ;;  %vm1817_vm7 = vcmask 261120  }
 0x513   : > { %v1798_v29 = vmul.f32 %v1790_v30, %v3034_v20  ;;  %v1686_v6 = vadd.f32 %v3152_v35, %v1685_v13  ;;  %vm1689_vm5 = vmor %vm1687_vm4, %vm1688_vm1  ;;  %vm1692_vm6 = vcmp.eq.f32.partialorder %v1691_v0, 8.507059e+37 }
 0x514   : > { %v1675_v24 = vsel %vm1674_vm2, %v3149_v17, %v1671_v44  ;;  %v1803_v17 = vld [vmem:[%s3288_s14] sm:$0xff] }
 0x515   : > { %1861 = vmatpush.msra.mxu3 %v1798_v29  ;;  %v1680_v57 = vsel %vm1677_vm3, %v1679_v26, %v1675_v24  ;;  %v1690_v20 = vsel %vm1689_vm5, %v3152_v35, %v1686_v6  ;;  %v1810_v35 = vpop.permute.xlu1 %1809 }
 0x516   : > { %v1787_v60 = vmul.f32 %v1680_v57, %v3037_v52  ;;  %v1695_v50 = vsel %vm1692_vm6, %v1694_v47, %v1690_v20 }
 0x517   : > { %v1788_v3 = vmul.f32 %v1695_v50, %v3040_v42 }
 0x518   : > { %v1795_v41 = vmul.f32 %v1787_v60, %v3037_v52  ;;  %v1804_v52 = vld [vmem:[%s3288_s14 + $0x8] sm:$0xff] }
 0x519   : > { %v1796_v37 = vmul.f32 %v1788_v3, %v3040_v42 }
 0x51a   : > { %1839 = vmatpush.msra.mxu2 %v1795_v41 }
 0x51b   : > { %1988 = vmatmul.msk.f32.vlgmr.msra.gmra.mxu2 %vm1817_vm7, %v1803_v17  ;;  %1862 = vmatpush.msra.mxu3 %v1796_v37 }
 0x51c   : > { %1990 = vmatmul.msk.f32.vlgmr.msra.gmra.mxu3 %vm1817_vm7, %v1803_v17 }
 0x523   : > { %1989 = vmatmul.msk.f32.gmra.mxu2 %vm1817_vm7, %v1804_v52 }
 0x524   : > { %1991 = vmatmul.msk.f32.gmra.mxu3 %vm1817_vm7, %v1804_v52 }
 0x59e   : > { %v1841_v12 = vpop.f32.mrf.mxu2 }
 0x59f   : > { %v1842_v51 = vadd.f32 %v1841_v12, %v1810_v35  ;;  %v1864_v8 = vpop.f32.mrf.mxu3 }
 0x5a0   : > { %v1865_v19 = vadd.f32 %v1864_v8, %v1810_v35 }
 0x5a1   : > { %v1870_v42 = vadd.f32 %v2158_v14, %v1842_v51 }
 0x5a2   : > { %v1871_v36 = vadd.f32 %v2159_v21, %v1865_v19 }
 0x5a3   : > { %1874 = vst [vmem:[%s514_s20] sm:$0xff] %v1870_v42 }
 0x5a4   : > { %1875 = vst [vmem:[%s514_s20 + $0x8] sm:$0xff] %v1871_v36 }
 0x5a6   : > { %v1844_v10 = vpop.f32.mrf.mxu2 }
 0x5a7   : > { %v1845_v49 = vadd.f32 %v1844_v10, %v1815_v28  ;;  %v1867_v56 = vpop.f32.mrf.mxu3 }
 0x5a8   : > { %v1868_v48 = vadd.f32 %v1867_v56, %v1815_v28 }
 0x5a9   : > { %v1872_v1 = vadd.f32 %v2160_v31, %v1845_v49 }
 0x5aa   : > { %v1873_v58 = vadd.f32 %v2161_v46, %v1868_v48 }
 0x5ab   : > { %1876 = vst [vmem:[%s514_s20 + $0x10] sm:$0xff] %v1872_v1 }
 0x5ac   : > { %1877 = vst [vmem:[%s514_s20 + $0x18] sm:$0xff] %v1873_v58 }
 0x5ad   : > { %2189 = shalt.err (!%p2186_p3)
}
 0x5ae   : > { %s2240_s29 = smov 256   ;;  %s3330_s1 = smov 16  }
 0x5af   : > { %1999 = dma.vmem_to_hbm [thread:$0]  (%p2364_p5), %s1892_s23, 512, %s1894_s30, %s1879_s25, %s2240_s29, %s2240_s29, %s3330_s1  }
 0x5b0 PF: > { %p2005_p4 = scmp.ge.s32.totalorder %s2224_s24, 2  ;;  %s1908_s20 = sand.u32 1, %s2212_s21  }
 0x5b1   : > { %s1909_s3 = scalar_lea.sflag [#allocation3], %s1908_s20 }
 0x5b2   : > { %p2002_p7 = pnand %p2005_p4, %p2368_p6 }
 0x5b4   : > { %p2003_p8 = pneg %p2002_p7 }
 0x5b6   : > { %2207 = dma.done.wait (%p2003_p8), %s1909_s3, 512  }
 0x5b7   : > { %2209 = vsyncadd (%p2003_p8), %s1909_s3, 4294966784  ;;  %s3331_s2 = sld [smem:[#allocation5_spill]]  ;;  %p26_p9 = scmp.ge.s32.totalorder %s2351_s27, 4  }
 0x5b8   : > { %s3332_s23 = sld [smem:[#allocation6_spill]]  ;;  %s3333_s21 = smov %s2216_s22 }
 0x5b9   : > { %s3335_s24 = smov %s2351_s27  ;;  %28 = sbr.rel (!%p26_p9) target bundleno = 9 (0x9), region = 120 }
 0x5bd   : > { %s3334_s22 = smov %s3331_s2 }
 0x5be   :  { %1915 = vsyncpa [#allocation3], 1 }
 0x5bf   :  { %1917 = vsyncpa [#allocation3 + $0x1], 1 }

</bundles_post_ra>
